<compile_context>
chip_gen: v6e
topology: v6e:2x2x1
jax: 0.10.0
libtpu: 0.0.40
codegen_flags: <defaults>
</compile_context>

<pallas_src>
import functools

import jax
import jax.numpy as jnp
import numpy as np
from jax import lax
from jax.experimental import pallas as pl
from jax.experimental.pallas import tpu as pltpu


# ----------------------------------------------------------------------------
# Fused kernel: depthwise conv + bias + InstanceNorm2d(affine) + 1x1 conv + bias
# One grid step == one batch element (NHWC blocks, C on lanes).
# ----------------------------------------------------------------------------
def _fused_kernel(x_ref, dw_w_ref, dw_b_ref, g_ref, beta_ref, pw_w_ref, pw_b_ref,
                  o_ref, *, K, stride, eps):
    # x_ref:     (1, Hp, Wp, C)   reflection-padded input, channel-last
    # dw_w_ref:  (K*K, C)         depthwise taps (tap-major, C on lanes)
    # dw_b_ref:  (1, C)           depthwise bias
    # g_ref:     (1, C)           instance-norm gamma
    # beta_ref:  (1, C)           instance-norm beta
    # pw_w_ref:  (C, Cout)        1x1 conv weight (already transposed)
    # pw_b_ref:  (1, Cout)        1x1 conv bias
    # o_ref:     (1, Ho*Wo, Cout) final output (spatial-flattened, channel-last)
    _, Hp, Wp, C = x_ref.shape
    Ho = (Hp - K) // stride + 1
    Wo = (Wp - K) // stride + 1

    # Hoist: one load of all K*K taps + per-channel params (no per-iter re-loads).
    taps = dw_w_ref[...].astype(jnp.float32)            # (K*K, C)

    # Depthwise conv: K*K FMAs over static ref windows (no VMEM value copies
    # for the common stride==1 case).
    acc = jnp.zeros((Ho, Wo, C), jnp.float32)
    for kh in range(K):
        for kw in range(K):
            if stride == 1:
                patch = x_ref[0, pl.ds(kh, Ho), pl.ds(kw, Wo), :].astype(jnp.float32)
            else:
                # TODO(synk): use strided pl.ds windows once strided sublane
                # reads are exercised; fall back to a contiguous window read +
                # strided value slice for stride > 1 (not hit by the test).
                span_h = stride * (Ho - 1) + 1
                span_w = stride * (Wo - 1) + 1
                win = x_ref[0, pl.ds(kh, span_h), pl.ds(kw, span_w), :].astype(jnp.float32)
                patch = lax.slice(win, (0, 0, 0), (span_h, span_w, C),
                                  (stride, stride, 1))
            acc = acc + patch * taps[kh * K + kw][None, None, :]

    # Flatten spatial -> (Ho*Wo, C): keeps C on lanes for all remaining math.
    y = acc.reshape(Ho * Wo, C) + dw_b_ref[...].astype(jnp.float32)

    # InstanceNorm2d: per-channel stats over spatial dims, biased variance.
    mean = jnp.mean(y, axis=0, keepdims=True)                      # (1, C)
    var = jnp.mean((y - mean) ** 2, axis=0, keepdims=True)         # (1, C)
    y = (y - mean) * lax.rsqrt(var + eps)
    y = y * g_ref[...].astype(jnp.float32) + beta_ref[...].astype(jnp.float32)

    # Fused 1x1 pointwise conv: (Ho*Wo, C) @ (C, Cout) + bias.
    # (Kept in f32; cast y / pw_w to bf16 here for large C on v6e/v7x if the
    #  accuracy budget allows — keep preferred_element_type=f32 accumulation.)
    out = jnp.dot(y, pw_w_ref[...].astype(jnp.float32),
                  preferred_element_type=jnp.float32)
    out = out + pw_b_ref[...].astype(jnp.float32)

    o_ref[0] = out.astype(o_ref.dtype)


# ----------------------------------------------------------------------------
# Wrapper: reflection pad + layout glue + pallas_call
# ----------------------------------------------------------------------------
def conv_layer_dpws_last(x, params, *, kernel_size, stride, eps=1e-5):
    N, C, H, W = x.shape
    K = kernel_size
    p = K // 2

    # Reflection pad + NCHW -> NHWC (boundary glue, trace-time only).
    xp = jnp.pad(x, ((0, 0), (0, 0), (p, p), (p, p)), mode="reflect")
    xp = xp.transpose(0, 2, 3, 1)                       # (N, Hp, Wp, C)
    Hp, Wp = H + 2 * p, W + 2 * p
    Ho = (Hp - K) // stride + 1
    Wo = (Wp - K) // stride + 1
    Cout = params["pw_w"].shape[0]

    w_taps = params["dw_w"].reshape(C, K * K).T          # (K*K, C)
    dw_b = params["dw_b"].reshape(1, C)
    gamma = params["gamma"].reshape(1, C)
    beta = params["beta"].reshape(1, C)
    pw_wt = params["pw_w"].T                             # (C, Cout)
    pw_b = params["pw_b"].reshape(1, Cout)

    kernel = functools.partial(_fused_kernel, K=K, stride=stride, eps=eps)

    # TODO(synk): for production-sized H*W on v7x (64 MiB VMEM) add an H-tile
    # grid axis with a (K-1)-row halo and a two-pass InstanceNorm (stats pass
    # + normalize pass); single-block-per-batch is fine at these shapes.
    out_flat = pl.pallas_call(
        kernel,
        out_shape=jax.ShapeDtypeStruct((N, Ho * Wo, Cout), jnp.float32),
        grid=(N,),
        in_specs=[
            pl.BlockSpec((1, Hp, Wp, C), lambda n: (n, 0, 0, 0)),
            pl.BlockSpec((K * K, C), lambda n: (0, 0)),
            pl.BlockSpec((1, C), lambda n: (0, 0)),
            pl.BlockSpec((1, C), lambda n: (0, 0)),
            pl.BlockSpec((1, C), lambda n: (0, 0)),
            pl.BlockSpec((C, Cout), lambda n: (0, 0)),
            pl.BlockSpec((1, Cout), lambda n: (0, 0)),
        ],
        out_specs=pl.BlockSpec((1, Ho * Wo, Cout), lambda n: (n, 0, 0)),
        compiler_params=pltpu.CompilerParams(dimension_semantics=("parallel",)),
    )(xp, w_taps, dw_b, gamma, beta, pw_wt, pw_b)

    # NHWC-flat -> NCHW (boundary glue).
    out = out_flat.reshape(N, Ho, Wo, Cout).transpose(0, 3, 1, 2)
    return out


# ----------------------------------------------------------------------------
# Pure-JAX reference (for verification only)
# ----------------------------------------------------------------------------
def ref_forward(x, params, *, kernel_size, stride, eps=1e-5):
    K = kernel_size
    p = K // 2
    C = x.shape[1]
    xp = jnp.pad(x, ((0, 0), (0, 0), (p, p), (p, p)), mode="reflect")
    y = lax.conv_general_dilated(
        xp,
        params["dw_w"].reshape(C, 1, K, K),
        window_strides=(stride, stride),
        padding="VALID",
        feature_group_count=C,
        dimension_numbers=("NCHW", "OIHW", "NCHW"),
    )
    y = y + params["dw_b"][None, :, None, None]
    mean = y.mean(axis=(2, 3), keepdims=True)
    var = ((y - mean) ** 2).mean(axis=(2, 3), keepdims=True)
    y = (y - mean) * lax.rsqrt(var + eps)
    y = y * params["gamma"][None, :, None, None] + params["beta"][None, :, None, None]
    out = jnp.einsum("nchw,oc->nohw", y, params["pw_w"])
    out = out + params["pw_b"][None, :, None, None]
    return out


def init_params(key, in_channels, out_channels, kernel_size):
    ks = jax.random.split(key, 6)
    C, Cout, K = in_channels, out_channels, kernel_size
    return {
        # conv1: depthwise Conv2d(C, C, K, groups=C) -> weight (C, 1, K, K), bias (C,)
        "dw_w": 0.1 * jax.random.normal(ks[0], (C, K, K), jnp.float32),
        "dw_b": 0.1 * jax.random.normal(ks[1], (C,), jnp.float32),
        # InstanceNorm2d(C, affine=True)
        "gamma": 1.0 + 0.1 * jax.random.normal(ks[2], (C,), jnp.float32),
        "beta": 0.1 * jax.random.normal(ks[3], (C,), jnp.float32),
        # conv2: Conv2d(C, Cout, 1) -> weight (Cout, C, 1, 1) stored as (Cout, C), bias (Cout,)
        "pw_w": 0.1 * jax.random.normal(ks[4], (Cout, C), jnp.float32),
        "pw_b": 0.1 * jax.random.normal(ks[5], (Cout,), jnp.float32),
    }


if __name__ == "__main__":
    key = jax.random.PRNGKey(0)
    k_x, k_p = jax.random.split(key)

    in_channels, out_channels, kernel_size, stride = 4, 8, 3, 1
    x = jax.random.normal(k_x, (2, in_channels, 16, 16), jnp.float32)
    params = init_params(k_p, in_channels, out_channels, kernel_size)

    out = conv_layer_dpws_last(x, params, kernel_size=kernel_size, stride=stride)
    out = jax.block_until_ready(out)

    ref = ref_forward(x, params, kernel_size=kernel_size, stride=stride)
    np.testing.assert_allclose(np.asarray(out), np.asarray(ref), rtol=1e-4, atol=1e-4)

    print("KERNEL_OK")
</pallas_src>

<mosaic_0001>
module attributes {stable_mosaic.version = 11 : i64} {
  func.func @_fused_kernel(%arg0: i32, %arg1: memref<1x18x18x4xf32, #tpu.memory_space<vmem>>, %arg2: memref<9x4xf32, #tpu.memory_space<vmem>>, %arg3: memref<1x4xf32, #tpu.memory_space<vmem>>, %arg4: memref<1x4xf32, #tpu.memory_space<vmem>>, %arg5: memref<1x4xf32, #tpu.memory_space<vmem>>, %arg6: memref<4x8xf32, #tpu.memory_space<vmem>>, %arg7: memref<1x8xf32, #tpu.memory_space<vmem>>, %arg8: memref<1x256x8xf32, #tpu.memory_space<vmem>>) attributes {dimension_semantics = [#tpu.dimension_semantics<parallel>], iteration_bounds = array<i64: 2>, scalar_prefetch = 0 : i64, scratch_operands = 0 : i64, tpu.core_type = #tpu.core_type<tc>, window_params = [{transform_indices = @transform_0, window_bounds = array<i64: 1, 18, 18, 4>}, {pipeline_mode = #tpu.pipeline_mode<synchronous>, transform_indices = @transform_1, window_bounds = array<i64: 9, 4>}, {pipeline_mode = #tpu.pipeline_mode<synchronous>, transform_indices = @transform_2, window_bounds = array<i64: 1, 4>}, {pipeline_mode = #tpu.pipeline_mode<synchronous>, transform_indices = @transform_3, window_bounds = array<i64: 1, 4>}, {pipeline_mode = #tpu.pipeline_mode<synchronous>, transform_indices = @transform_4, window_bounds = array<i64: 1, 4>}, {pipeline_mode = #tpu.pipeline_mode<synchronous>, transform_indices = @transform_5, window_bounds = array<i64: 4, 8>}, {pipeline_mode = #tpu.pipeline_mode<synchronous>, transform_indices = @transform_6, window_bounds = array<i64: 1, 8>}, {transform_indices = @transform_7, window_bounds = array<i64: 1, 256, 8>}]} {
    %c0 = arith.constant 0 : index
    %c0_0 = arith.constant 0 : index
    %0 = vector.load %arg2[%c0, %c0_0] : memref<9x4xf32, #tpu.memory_space<vmem>>, vector<9x4xf32>
    %cst = arith.constant 0.000000e+00 : f32
    %1 = vector.broadcast %cst : f32 to vector<16x16x4xf32>
    %c0_1 = arith.constant 0 : index
    %c0_2 = arith.constant 0 : index
    %c0_3 = arith.constant 0 : index
    %c0_4 = arith.constant 0 : index
    %2 = vector.load %arg1[%c0_1, %c0_2, %c0_3, %c0_4] : memref<1x18x18x4xf32, #tpu.memory_space<vmem>>, vector<1x16x16x4xf32>
    %3 = vector.shape_cast %2 : vector<1x16x16x4xf32> to vector<16x16x4xf32>
    %4 = vector.extract_strided_slice %0 {offsets = [0, 0], sizes = [1, 4], strides = [1, 1]} : vector<9x4xf32> to vector<1x4xf32>
    %5 = vector.shape_cast %4 : vector<1x4xf32> to vector<4xf32>
    %6 = vector.shape_cast %5 : vector<4xf32> to vector<1x1x4xf32>
    %7 = vector.broadcast %6 : vector<1x1x4xf32> to vector<16x16x4xf32>
    %8 = arith.mulf %3, %7 : vector<16x16x4xf32>
    %9 = arith.addf %1, %8 : vector<16x16x4xf32>
    %c0_5 = arith.constant 0 : index
    %c0_6 = arith.constant 0 : index
    %c1 = arith.constant 1 : index
    %c0_7 = arith.constant 0 : index
    %10 = vector.load %arg1[%c0_5, %c0_6, %c1, %c0_7] : memref<1x18x18x4xf32, #tpu.memory_space<vmem>>, vector<1x16x16x4xf32>
    %11 = vector.shape_cast %10 : vector<1x16x16x4xf32> to vector<16x16x4xf32>
    %12 = vector.extract_strided_slice %0 {offsets = [1, 0], sizes = [1, 4], strides = [1, 1]} : vector<9x4xf32> to vector<1x4xf32>
    %13 = vector.shape_cast %12 : vector<1x4xf32> to vector<4xf32>
    %14 = vector.shape_cast %13 : vector<4xf32> to vector<1x1x4xf32>
    %15 = vector.broadcast %14 : vector<1x1x4xf32> to vector<16x16x4xf32>
    %16 = arith.mulf %11, %15 : vector<16x16x4xf32>
    %17 = arith.addf %9, %16 : vector<16x16x4xf32>
    %c0_8 = arith.constant 0 : index
    %c0_9 = arith.constant 0 : index
    %c2 = arith.constant 2 : index
    %c0_10 = arith.constant 0 : index
    %18 = vector.load %arg1[%c0_8, %c0_9, %c2, %c0_10] : memref<1x18x18x4xf32, #tpu.memory_space<vmem>>, vector<1x16x16x4xf32>
    %19 = vector.shape_cast %18 : vector<1x16x16x4xf32> to vector<16x16x4xf32>
    %20 = vector.extract_strided_slice %0 {offsets = [2, 0], sizes = [1, 4], strides = [1, 1]} : vector<9x4xf32> to vector<1x4xf32>
    %21 = vector.shape_cast %20 : vector<1x4xf32> to vector<4xf32>
    %22 = vector.shape_cast %21 : vector<4xf32> to vector<1x1x4xf32>
    %23 = vector.broadcast %22 : vector<1x1x4xf32> to vector<16x16x4xf32>
    %24 = arith.mulf %19, %23 : vector<16x16x4xf32>
    %25 = arith.addf %17, %24 : vector<16x16x4xf32>
    %c0_11 = arith.constant 0 : index
    %c1_12 = arith.constant 1 : index
    %c0_13 = arith.constant 0 : index
    %c0_14 = arith.constant 0 : index
    %26 = vector.load %arg1[%c0_11, %c1_12, %c0_13, %c0_14] : memref<1x18x18x4xf32, #tpu.memory_space<vmem>>, vector<1x16x16x4xf32>
    %27 = vector.shape_cast %26 : vector<1x16x16x4xf32> to vector<16x16x4xf32>
    %28 = vector.extract_strided_slice %0 {offsets = [3, 0], sizes = [1, 4], strides = [1, 1]} : vector<9x4xf32> to vector<1x4xf32>
    %29 = vector.shape_cast %28 : vector<1x4xf32> to vector<4xf32>
    %30 = vector.shape_cast %29 : vector<4xf32> to vector<1x1x4xf32>
    %31 = vector.broadcast %30 : vector<1x1x4xf32> to vector<16x16x4xf32>
    %32 = arith.mulf %27, %31 : vector<16x16x4xf32>
    %33 = arith.addf %25, %32 : vector<16x16x4xf32>
    %c0_15 = arith.constant 0 : index
    %c1_16 = arith.constant 1 : index
    %c1_17 = arith.constant 1 : index
    %c0_18 = arith.constant 0 : index
    %34 = vector.load %arg1[%c0_15, %c1_16, %c1_17, %c0_18] : memref<1x18x18x4xf32, #tpu.memory_space<vmem>>, vector<1x16x16x4xf32>
    %35 = vector.shape_cast %34 : vector<1x16x16x4xf32> to vector<16x16x4xf32>
    %36 = vector.extract_strided_slice %0 {offsets = [4, 0], sizes = [1, 4], strides = [1, 1]} : vector<9x4xf32> to vector<1x4xf32>
    %37 = vector.shape_cast %36 : vector<1x4xf32> to vector<4xf32>
    %38 = vector.shape_cast %37 : vector<4xf32> to vector<1x1x4xf32>
    %39 = vector.broadcast %38 : vector<1x1x4xf32> to vector<16x16x4xf32>
    %40 = arith.mulf %35, %39 : vector<16x16x4xf32>
    %41 = arith.addf %33, %40 : vector<16x16x4xf32>
    %c0_19 = arith.constant 0 : index
    %c1_20 = arith.constant 1 : index
    %c2_21 = arith.constant 2 : index
    %c0_22 = arith.constant 0 : index
    %42 = vector.load %arg1[%c0_19, %c1_20, %c2_21, %c0_22] : memref<1x18x18x4xf32, #tpu.memory_space<vmem>>, vector<1x16x16x4xf32>
    %43 = vector.shape_cast %42 : vector<1x16x16x4xf32> to vector<16x16x4xf32>
    %44 = vector.extract_strided_slice %0 {offsets = [5, 0], sizes = [1, 4], strides = [1, 1]} : vector<9x4xf32> to vector<1x4xf32>
    %45 = vector.shape_cast %44 : vector<1x4xf32> to vector<4xf32>
    %46 = vector.shape_cast %45 : vector<4xf32> to vector<1x1x4xf32>
    %47 = vector.broadcast %46 : vector<1x1x4xf32> to vector<16x16x4xf32>
    %48 = arith.mulf %43, %47 : vector<16x16x4xf32>
    %49 = arith.addf %41, %48 : vector<16x16x4xf32>
    %c0_23 = arith.constant 0 : index
    %c2_24 = arith.constant 2 : index
    %c0_25 = arith.constant 0 : index
    %c0_26 = arith.constant 0 : index
    %50 = vector.load %arg1[%c0_23, %c2_24, %c0_25, %c0_26] : memref<1x18x18x4xf32, #tpu.memory_space<vmem>>, vector<1x16x16x4xf32>
    %51 = vector.shape_cast %50 : vector<1x16x16x4xf32> to vector<16x16x4xf32>
    %52 = vector.extract_strided_slice %0 {offsets = [6, 0], sizes = [1, 4], strides = [1, 1]} : vector<9x4xf32> to vector<1x4xf32>
    %53 = vector.shape_cast %52 : vector<1x4xf32> to vector<4xf32>
    %54 = vector.shape_cast %53 : vector<4xf32> to vector<1x1x4xf32>
    %55 = vector.broadcast %54 : vector<1x1x4xf32> to vector<16x16x4xf32>
    %56 = arith.mulf %51, %55 : vector<16x16x4xf32>
    %57 = arith.addf %49, %56 : vector<16x16x4xf32>
    %c0_27 = arith.constant 0 : index
    %c2_28 = arith.constant 2 : index
    %c1_29 = arith.constant 1 : index
    %c0_30 = arith.constant 0 : index
    %58 = vector.load %arg1[%c0_27, %c2_28, %c1_29, %c0_30] : memref<1x18x18x4xf32, #tpu.memory_space<vmem>>, vector<1x16x16x4xf32>
    %59 = vector.shape_cast %58 : vector<1x16x16x4xf32> to vector<16x16x4xf32>
    %60 = vector.extract_strided_slice %0 {offsets = [7, 0], sizes = [1, 4], strides = [1, 1]} : vector<9x4xf32> to vector<1x4xf32>
    %61 = vector.shape_cast %60 : vector<1x4xf32> to vector<4xf32>
    %62 = vector.shape_cast %61 : vector<4xf32> to vector<1x1x4xf32>
    %63 = vector.broadcast %62 : vector<1x1x4xf32> to vector<16x16x4xf32>
    %64 = arith.mulf %59, %63 : vector<16x16x4xf32>
    %65 = arith.addf %57, %64 : vector<16x16x4xf32>
    %c0_31 = arith.constant 0 : index
    %c2_32 = arith.constant 2 : index
    %c2_33 = arith.constant 2 : index
    %c0_34 = arith.constant 0 : index
    %66 = vector.load %arg1[%c0_31, %c2_32, %c2_33, %c0_34] : memref<1x18x18x4xf32, #tpu.memory_space<vmem>>, vector<1x16x16x4xf32>
    %67 = vector.shape_cast %66 : vector<1x16x16x4xf32> to vector<16x16x4xf32>
    %68 = vector.extract_strided_slice %0 {offsets = [8, 0], sizes = [1, 4], strides = [1, 1]} : vector<9x4xf32> to vector<1x4xf32>
    %69 = vector.shape_cast %68 : vector<1x4xf32> to vector<4xf32>
    %70 = vector.shape_cast %69 : vector<4xf32> to vector<1x1x4xf32>
    %71 = vector.broadcast %70 : vector<1x1x4xf32> to vector<16x16x4xf32>
    %72 = arith.mulf %67, %71 : vector<16x16x4xf32>
    %73 = arith.addf %65, %72 : vector<16x16x4xf32>
    %74 = vector.shape_cast %73 : vector<16x16x4xf32> to vector<256x4xf32>
    %c0_35 = arith.constant 0 : index
    %c0_36 = arith.constant 0 : index
    %75 = vector.load %arg3[%c0_35, %c0_36] : memref<1x4xf32, #tpu.memory_space<vmem>>, vector<1x4xf32>
    %76 = vector.broadcast %75 : vector<1x4xf32> to vector<256x4xf32>
    %77 = arith.addf %74, %76 : vector<256x4xf32>
    %cst_37 = arith.constant dense<0.000000e+00> : vector<4xf32>
    %78 = vector.multi_reduction <add>, %77, %cst_37 [0] : vector<256x4xf32> to vector<4xf32>
    %79 = vector.shape_cast %78 : vector<4xf32> to vector<1x4xf32>
    %cst_38 = arith.constant 2.560000e+02 : f32
    %80 = vector.broadcast %cst_38 : f32 to vector<1x4xf32>
    %81 = arith.divf %79, %80 : vector<1x4xf32>
    %82 = vector.broadcast %81 : vector<1x4xf32> to vector<256x4xf32>
    %83 = arith.subf %77, %82 : vector<256x4xf32>
    %84 = arith.mulf %83, %83 : vector<256x4xf32>
    %cst_39 = arith.constant dense<0.000000e+00> : vector<4xf32>
    %85 = vector.multi_reduction <add>, %84, %cst_39 [0] : vector<256x4xf32> to vector<4xf32>
    %86 = vector.shape_cast %85 : vector<4xf32> to vector<1x4xf32>
    %cst_40 = arith.constant 2.560000e+02 : f32
    %87 = vector.broadcast %cst_40 : f32 to vector<1x4xf32>
    %88 = arith.divf %86, %87 : vector<1x4xf32>
    %89 = vector.broadcast %81 : vector<1x4xf32> to vector<256x4xf32>
    %90 = arith.subf %77, %89 : vector<256x4xf32>
    %cst_41 = arith.constant 9.99999974E-6 : f32
    %91 = vector.broadcast %cst_41 : f32 to vector<1x4xf32>
    %92 = arith.addf %88, %91 : vector<1x4xf32>
    %93 = math.rsqrt %92 : vector<1x4xf32>
    %94 = vector.broadcast %93 : vector<1x4xf32> to vector<256x4xf32>
    %95 = arith.mulf %90, %94 : vector<256x4xf32>
    %c0_42 = arith.constant 0 : index
    %c0_43 = arith.constant 0 : index
    %96 = vector.load %arg4[%c0_42, %c0_43] : memref<1x4xf32, #tpu.memory_space<vmem>>, vector<1x4xf32>
    %97 = vector.broadcast %96 : vector<1x4xf32> to vector<256x4xf32>
    %98 = arith.mulf %95, %97 : vector<256x4xf32>
    %c0_44 = arith.constant 0 : index
    %c0_45 = arith.constant 0 : index
    %99 = vector.load %arg5[%c0_44, %c0_45] : memref<1x4xf32, #tpu.memory_space<vmem>>, vector<1x4xf32>
    %100 = vector.broadcast %99 : vector<1x4xf32> to vector<256x4xf32>
    %101 = arith.addf %98, %100 : vector<256x4xf32>
    %c0_46 = arith.constant 0 : index
    %c0_47 = arith.constant 0 : index
    %102 = vector.load %arg6[%c0_46, %c0_47] : memref<4x8xf32, #tpu.memory_space<vmem>>, vector<4x8xf32>
    %cst_48 = arith.constant dense<0.000000e+00> : vector<256x8xf32>
    %103 = tpu.matmul %101, %102, %cst_48 {dimension_numbers = #tpu.dot_dimension_numbers<[1], [0], [0], [1], [0, 0, 1, 1], [], []>} : vector<256x4xf32>, vector<4x8xf32>, vector<256x8xf32> -> vector<256x8xf32>
    %c0_49 = arith.constant 0 : index
    %c0_50 = arith.constant 0 : index
    %104 = vector.load %arg7[%c0_49, %c0_50] : memref<1x8xf32, #tpu.memory_space<vmem>>, vector<1x8xf32>
    %105 = vector.broadcast %104 : vector<1x8xf32> to vector<256x8xf32>
    %106 = arith.addf %103, %105 : vector<256x8xf32>
    %c0_51 = arith.constant 0 : index
    %c0_52 = arith.constant 0 : index
    %c0_53 = arith.constant 0 : index
    %107 = vector.load %arg8[%c0_51, %c0_52, %c0_53] : memref<1x256x8xf32, #tpu.memory_space<vmem>>, vector<1x256x8xf32>
    %108 = vector.shape_cast %107 : vector<1x256x8xf32> to vector<256x8xf32>
    %109 = vector.shape_cast %106 : vector<256x8xf32> to vector<1x256x8xf32>
    tpu.vector_store %arg8[%c0_51, %c0_52, %c0_53], %109 {strides = array<i32>} : memref<1x256x8xf32, #tpu.memory_space<vmem>>, vector<1x256x8xf32>,
    return
  }
  func.func @transform_0(%arg0: i32) -> (i32, i32, i32, i32) {
    %c0_i32 = arith.constant 0 : i32
    %c0_i32_0 = arith.constant 0 : i32
    %c0_i32_1 = arith.constant 0 : i32
    %c0_i32_2 = arith.constant 0 : i32
    return %arg0, %c0_i32, %c0_i32_0, %c0_i32_1 : i32, i32, i32, i32
  }
  func.func @transform_1(%arg0: i32) -> (i32, i32) {
    %c0_i32 = arith.constant 0 : i32
    %c0_i32_0 = arith.constant 0 : i32
    %c0_i32_1 = arith.constant 0 : i32
    return %c0_i32, %c0_i32_0 : i32, i32
  }
  func.func @transform_2(%arg0: i32) -> (i32, i32) {
    %c0_i32 = arith.constant 0 : i32
    %c0_i32_0 = arith.constant 0 : i32
    %c0_i32_1 = arith.constant 0 : i32
    return %c0_i32, %c0_i32_0 : i32, i32
  }
  func.func @transform_3(%arg0: i32) -> (i32, i32) {
    %c0_i32 = arith.constant 0 : i32
    %c0_i32_0 = arith.constant 0 : i32
    %c0_i32_1 = arith.constant 0 : i32
    return %c0_i32, %c0_i32_0 : i32, i32
  }
  func.func @transform_4(%arg0: i32) -> (i32, i32) {
    %c0_i32 = arith.constant 0 : i32
    %c0_i32_0 = arith.constant 0 : i32
    %c0_i32_1 = arith.constant 0 : i32
    return %c0_i32, %c0_i32_0 : i32, i32
  }
  func.func @transform_5(%arg0: i32) -> (i32, i32) {
    %c0_i32 = arith.constant 0 : i32
    %c0_i32_0 = arith.constant 0 : i32
    %c0_i32_1 = arith.constant 0 : i32
    return %c0_i32, %c0_i32_0 : i32, i32
  }
  func.func @transform_6(%arg0: i32) -> (i32, i32) {
    %c0_i32 = arith.constant 0 : i32
    %c0_i32_0 = arith.constant 0 : i32
    %c0_i32_1 = arith.constant 0 : i32
    return %c0_i32, %c0_i32_0 : i32, i32
  }
  func.func @transform_7(%arg0: i32) -> (i32, i32, i32) {
    %c0_i32 = arith.constant 0 : i32
    %c0_i32_0 = arith.constant 0 : i32
    %c0_i32_1 = arith.constant 0 : i32
    return %arg0, %c0_i32, %c0_i32_0 : i32, i32, i32
  }
}

</mosaic_0001>

<bundles_post_ra>
// kernel: tpu_custom_call.1
= control target key start
LH: loop header
LB: loop body
LE: loop exit
PB: predicated region body
PF: predicated region fallthrough
CT: control target
= control target key end

     0   :  { %s2346_s24 = smov 0   ;;  %s4491_s0 = inlined_call_operand.vmem [shape: f32[2,18,18,4], index: 0, kind: input, shape index: {}]   ;;  %s4492_s1 = inlined_call_operand.vmem [shape: f32[9,4], index: 1, kind: input, shape index: {}]   ;;  %s4493_s2 = inlined_call_operand.vmem [shape: f32[1,4], index: 2, kind: input, shape index: {}]   ;;  %s4494_s3 = inlined_call_operand.vmem [shape: f32[1,4], index: 3, kind: input, shape index: {}]   ;;  %s4495_s4 = inlined_call_operand.vmem [shape: f32[1,4], index: 4, kind: input, shape index: {}]   ;;  %s4496_s5 = inlined_call_operand.vmem [shape: f32[4,8], index: 5, kind: input, shape index: {}]   ;;  %s4497_s6 = inlined_call_operand.vmem [shape: f32[1,8], index: 6, kind: input, shape index: {}]   ;;  %s4498_s7 = inlined_call_operand.vmem [shape: f32[2,256,8], index: 7, kind: output, shape index: {}]  }
   0x1 LB: > { %s1961_s25 = sadd.s32 4294967295, %s2304_s24   ;;  %p1965_p0 = scmp.ge.s32.totalorder %s2304_s24, 1  ;;  %s2304_s24 = sphi %s2346_s24, %s17_s24  }
   0x2   : > { %p237_p1 = scmp.lt.s32.totalorder %s2304_s24, 3 }
   0x4   : > { %p238_p2 = pnand %p1965_p0, %p237_p1 }
   0x6   : > { %241 = sbr.rel (%p238_p2) target bundleno = 558 (0x22e), region = 48 }
   0xb   : > { %v1540_v0 = vld [vmem:[%s4496_s5] sm:$0xf]  ;;  %vm1644_vm0 = vcmask 1043456   ;;  %p269_p3 = scmp.lt.s32.totalorder %s1961_s25, 1  ;;  %v313_v1 = vlaneseq  ;;  %vm1222_vm1 = vcmask 31744   ;;  %vm1873_vm2 = vcmask 64512  }
   0xc   : > { %2235 = vmatprep.subr.msk.mxu0 %vm1644_vm0, %v1540_v0  ;;  %2285 = vmatprep.subr.msk.mxu1 %vm1644_vm0, %v1540_v0  ;;  %v279_v5 = vld [vmem:[%s4492_s1] sm:$0xff] }
   0xd   : > { %2236 = vmatpush3.msk.msra.mxu0 %vm1644_vm0, %v1540_v0  ;;  %2286 = vmatpush3.msk.msra.mxu1 %vm1644_vm0, %v1540_v0  ;;  %s4892_s25 = smov (!%p269_p3, %s1961_s25), 1  ;;  %v314_v2 = vshrl.u32 %v313_v1, 7 }
   0xe   : > { %s2287_s28 = smul.u32 432, %s4892_s25  ;;  %s2201_s19 = sshll.u32 %s4892_s25, 8 }
   0xf   : > { %v315_v3 = vsub.s32 0, %v314_v2  ;;  %v616_v4 = vsub.s32 3, %v314_v2  ;;  %v415_v6 = vsub.s32 1, %v314_v2  ;;  %v515_v7 = vsub.s32 2, %v314_v2  ;;  %s4390_s26 = scalar_lea.vmem %s4498_s7, %s2201_s19 }
  0x10   : > { %s2363_s8 = scalar_lea.vmem %s4491_s0, %s2287_s28  ;;  %v716_v8 = vsub.s32 4, %v314_v2  ;;  %v816_v9 = vsub.s32 5, %v314_v2  ;;  %v917_v10 = vsub.s32 6, %v314_v2  ;;  %v1017_v11 = vsub.s32 7, %v314_v2 }
  0x11   : > { %v281_v12 = vld [vmem:[%s2363_s8] sm:$0xff]  ;;  %v2369_v13 = vrot.slane %v279_v5, %v315_v3  ;;  %v2371_v14 = vrot.slane %v279_v5, %v616_v4  ;;  %v282_v15 = vld [vmem:[%s2363_s8 + $0x8] sm:$0xff]  ;;  %v283_v16 = vld [vmem:[%s2363_s8 + $0x18] sm:$0xff]  ;;  %v2379_v21 = vrot.slane %v279_v5, %v415_v6  ;;  %v2381_v22 = vrot.slane %v279_v5, %v515_v7 }
  0x12   : > { %v284_v17 = vld [vmem:[%s2363_s8 + $0x20] sm:$0xff]  ;;  %v285_v18 = vld [vmem:[%s2363_s8 + $0x30] sm:$0xff]  ;;  %v286_v19 = vld [vmem:[%s2363_s8 + $0x38] sm:$0xff]  ;;  %v2386_v26 = vrot.slane %v279_v5, %v716_v8  ;;  %v2388_v27 = vrot.slane %v279_v5, %v816_v9  ;;  %v2390_v28 = vrot.slane %v279_v5, %v917_v10  ;;  %v2392_v29 = vrot.slane %v279_v5, %v1017_v11 }
  0x13   : > { %4589 = vst [vmem:[#allocation2_spill] sm:$0xff] %v2371_v14  ;;  %v287_v20 = vld [vmem:[%s2363_s8 + $0x48] sm:$0xff]  ;;  %v288_v23 = vld [vmem:[%s2363_s8 + $0x50] sm:$0xff]  ;;  %v289_v24 = vld [vmem:[%s2363_s8 + $0x60] sm:$0xff]  ;;  %v2404_v33 = vmul.f32 %v2369_v13, %v281_v12  ;;  %v2407_v34 = vmul.f32 %v2369_v13, %v282_v15  ;;  %v2410_v35 = vmul.f32 %v2369_v13, %v283_v16  ;;  %v2413_v36 = vmul.f32 %v2371_v14, %v283_v16 }
  0x14   : > { %v290_v25 = vld [vmem:[%s2363_s8 + $0x68] sm:$0xff]  ;;  %4590 = vst [vmem:[#allocation3_spill] sm:$0xff] %v2386_v26  ;;  %4591 = vst [vmem:[#allocation4_spill] sm:$0xff] %v2388_v27  ;;  %v2395_v30 = vld [vmem:[%s2363_s8 + $0x78] sm:$0xff]  ;;  %v2425_v40 = vmul.f32 %v2369_v13, %v284_v17  ;;  %v2428_v41 = vmul.f32 %v2369_v13, %v285_v18  ;;  %v2431_v42 = vmul.f32 %v2369_v13, %v286_v19 }
  0x15   : > { %4592 = vst [vmem:[#allocation5_spill] sm:$0xff] %v2390_v28  ;;  %4593 = vst [vmem:[#allocation6_spill] sm:$0xff] %v2392_v29  ;;  %v2398_v31 = vld [vmem:[%s2363_s8 + $0x80] sm:$0xff]  ;;  %v2401_v32 = vld [vmem:[%s2363_s8 + $0x90] sm:$0xff]  ;;  %v2434_v43 = vmul.f32 %v2371_v14, %v284_v17  ;;  %v2446_v47 = vmul.f32 %v2369_v13, %v287_v20  ;;  %v2449_v48 = vmul.f32 %v2369_v13, %v288_v23 }
  0x16   : > { %4594 = vst [vmem:[#allocation7_spill] sm:$0xff] %v2413_v36  ;;  %v2416_v37 = vld [vmem:[%s2363_s8 + $0x98] sm:$0xff]  ;;  %v2419_v38 = vld [vmem:[%s2363_s8 + $0xa8] sm:$0xff]  ;;  %v2422_v39 = vld [vmem:[%s2363_s8 + $0xb0] sm:$0xff]  ;;  %v2452_v49 = vmul.f32 %v2369_v13, %v289_v24  ;;  %v2455_v50 = vmul.f32 %v2371_v14, %v285_v18  ;;  %v2467_v54 = vmul.f32 %v2369_v13, %v290_v25  ;;  %v2471_v55 = vmul.f32 %v2369_v13, %v2395_v30 }
  0x17   : > { %4595 = vst [vmem:[#allocation8_spill] sm:$0xff] %v2419_v38  ;;  %4596 = vst [vmem:[#allocation9_spill] sm:$0xff] %v2422_v39  ;;  %v2437_v44 = vld [vmem:[%s2363_s8 + $0xc0] sm:$0xff]  ;;  %v2440_v45 = vld [vmem:[%s2363_s8 + $0xc8] sm:$0xff]  ;;  %v2475_v56 = vmul.f32 %v2369_v13, %v2398_v31  ;;  %v2478_v57 = vmul.f32 %v2371_v14, %v286_v19  ;;  %v2491_v61 = vmul.f32 %v2369_v13, %v2401_v32 }
  0x18   : > { %4597 = vst [vmem:[#allocation10_spill] sm:$0xff] %v2434_v43  ;;  %4598 = vst [vmem:[#allocation11_spill] sm:$0xff] %v2437_v44  ;;  %v2443_v46 = vld [vmem:[%s2363_s8 + $0xd8] sm:$0xff]  ;;  %v2458_v51 = vld [vmem:[%s2363_s8 + $0xe0] sm:$0xff]  ;;  %v2495_v62 = vmul.f32 %v2369_v13, %v2416_v37  ;;  %v2499_v63 = vmul.f32 %v2369_v13, %v2419_v38  ;;  %v2502_v0 = vmul.f32 %v2371_v14, %v287_v20 }
  0x19   : > { %4599 = vst [vmem:[#allocation12_spill] sm:$0xff] %v2440_v45  ;;  %4600 = vst [vmem:[#allocation13_spill] sm:$0xff] %v2443_v46  ;;  %v2461_v52 = vld [vmem:[%s2363_s8 + $0xf0] sm:$0xff]  ;;  %v2464_v53 = vld [vmem:[%s2363_s8 + $0xf8] sm:$0xff]  ;;  %v2512_v3 = vmul.f32 %v2369_v13, %v2422_v39  ;;  %v2516_v4 = vmul.f32 %v2369_v13, %v2437_v44  ;;  %v2520_v5 = vmul.f32 %v2369_v13, %v2440_v45 }
  0x1a   : > { %4601 = vst [vmem:[#allocation14_spill] sm:$0xff] %v2455_v50  ;;  %4602 = vst [vmem:[#allocation15_spill] sm:$0xff] %v2458_v51  ;;  %v2481_v58 = vld [vmem:[%s2363_s8 + $0x108] sm:$0xff]  ;;  %v2484_v59 = vld [vmem:[%s2363_s8 + $0x110] sm:$0xff]  ;;  %v2524_v7 = vmul.f32 %v2371_v14, %v288_v23  ;;  %v2534_v10 = vmul.f32 %v2369_v13, %v2443_v46  ;;  %v2538_v11 = vmul.f32 %v2369_v13, %v2458_v51 }
  0x1b   : > { %4603 = vst [vmem:[#allocation16_spill] sm:$0xff] %v2461_v52  ;;  %4604 = vst [vmem:[#allocation17_spill] sm:$0xff] %v2464_v53  ;;  %v2487_v60 = vld [vmem:[%s2363_s8 + $0x120] sm:$0xff]  ;;  %v2505_v1 = vld [vmem:[%s2363_s8 + $0x128] sm:$0xff]  ;;  %v2542_v12 = vmul.f32 %v2369_v13, %v2461_v52  ;;  %v2546_v16 = vmul.f32 %v2371_v14, %v289_v24  ;;  %v2556_v19 = vmul.f32 %v2369_v13, %v2464_v53 }
  0x1c   : > { %4605 = vst [vmem:[#allocation18_spill] sm:$0xff] %v2478_v57  ;;  %4606 = vst [vmem:[#allocation19_spill] sm:$0xff] %v2481_v58  ;;  %v2508_v2 = vld [vmem:[%s2363_s8 + $0x138] sm:$0xff]  ;;  %v381_v6 = vld [vmem:[%s2363_s8 + $0x1] sm:$0xff]  ;;  %v2560_v20 = vmul.f32 %v2369_v13, %v2481_v58  ;;  %v2564_v23 = vmul.f32 %v2369_v13, %v2484_v59  ;;  %v2570_v29 = vmul.f32 %v2371_v14, %v290_v25 }
  0x1d   : > { %4607 = vst [vmem:[#allocation20_spill] sm:$0xff] %v2484_v59  ;;  %4608 = vst [vmem:[#allocation21_spill] sm:$0xff] %v2487_v60  ;;  %v2527_v8 = vld [vmem:[%s2363_s8 + $0x140] sm:$0xff]  ;;  %v2530_v9 = vld [vmem:[%s2363_s8 + $0x150] sm:$0xff]  ;;  %v2577_v27 = vmul.f32 %v2369_v13, %v2487_v60  ;;  %v2581_v26 = vmul.f32 %v2369_v13, %v2505_v1  ;;  %v417_v25 = vmul.f32 %v2379_v21, %v381_v6 }
  0x1e   : > { %4609 = vst [vmem:[#allocation22_spill] sm:$0xff] %v2502_v0  ;;  %4610 = vst [vmem:[#allocation23_spill] sm:$0xff] %v2505_v1  ;;  %v382_v15 = vld [vmem:[%s2363_s8 + $0x9] sm:$0xff]  ;;  %v2549_v17 = vld [vmem:[%s2363_s8 + $0x158] sm:$0xff]  ;;  %v2597_v0 = vmul.f32 %v2369_v13, %v2530_v9  ;;  %v2611_v6 = vmul.f32 %v2371_v14, %v2395_v30  ;;  %v2653_v58 = vmul.f32 %v2371_v14, %v2401_v32 }
  0x1f   : > { %4611 = vst [vmem:[#allocation24_spill] sm:$0xff] %v2508_v2  ;;  %4612 = vst [vmem:[#allocation25_spill] sm:$0xff] %v2524_v7  ;;  %v2552_v18 = vld [vmem:[%s2363_s8 + $0x168] sm:$0xff]  ;;  %v2567_v24 = vld [vmem:[%s2363_s8 + $0x19] sm:$0xff]  ;;  %v418_v36 = vmul.f32 %v2379_v21, %v382_v15 }
  0x20   : > { %4613 = vst [vmem:[#allocation26_spill] sm:$0xff] %v2527_v8  ;;  %4614 = vst [vmem:[#allocation27_spill] sm:$0xff] %v2530_v9  ;;  %v2573_v28 = vld [vmem:[%s2363_s8 + $0x170] sm:$0xff]  ;;  %v2588_v7 = vld [vmem:[%s2363_s8 + $0x21] sm:$0xff]  ;;  %v2619_v9 = vmul.f32 %v2369_v13, %v2552_v18  ;;  %v419_v30 = vmul.f32 %v2379_v21, %v2567_v24 }
  0x21   : > { %4615 = vst [vmem:[#allocation28_spill] sm:$0xff] %v2546_v16  ;;  %4616 = vst [vmem:[#allocation29_spill] sm:$0xff] %v2549_v17  ;;  %v2585_v16 = vmul.f32 %v2369_v13, %v2508_v2  ;;  %v2600_v57 = vld [vmem:[%s2363_s8 + $0x31] sm:$0xff]  ;;  %v2603_v50 = vld [vmem:[%s2363_s8 + $0x39] sm:$0xff] }
  0x22   : > { %4617 = vst [vmem:[#allocation30_spill] sm:$0xff] %v2552_v18  ;;  %4618 = vst [vmem:[#allocation31_spill] sm:$0xff] %v2567_v24  ;;  %v2606_v43 = vld [vmem:[%s2363_s8 + $0x49] sm:$0xff]  ;;  %v2622_v2 = vld [vmem:[%s2363_s8 + $0x51] sm:$0xff]  ;;  %v420_v24 = vmul.f32 %v2379_v21, %v2588_v7  ;;  %v422_v32 = vmul.f32 %v2379_v21, %v2603_v50 }
  0x23   : > { %4619 = vst [vmem:[#allocation32_spill] sm:$0xff] %v2570_v29  ;;  %4620 = vst [vmem:[#allocation33_spill] sm:$0xff] %v2573_v28  ;;  %v2593_v29 = vmul.f32 %v2369_v13, %v2527_v8  ;;  %v2615_v8 = vmul.f32 %v2369_v13, %v2549_v17  ;;  %v2625_v1 = vld [vmem:[%s2363_s8 + $0x61] sm:$0xff]  ;;  %v2628_v15 = vld [vmem:[%s2363_s8 + $0x69] sm:$0xff]  ;;  %v2638_v17 = vmul.f32 %v2369_v13, %v2573_v28 }
  0x24   : > { %4621 = vst [vmem:[#allocation34_spill] sm:$0xff] %v2588_v7  ;;  %4622 = vst [vmem:[#allocation35_spill] sm:$0xff] %v2600_v57  ;;  %v2641_v18 = vld [vmem:[%s2363_s8 + $0x79] sm:$0xff]  ;;  %v2644_v60 = vld [vmem:[%s2363_s8 + $0x81] sm:$0xff]  ;;  %v421_v7 = vmul.f32 %v2379_v21, %v2600_v57  ;;  %v424_v57 = vmul.f32 %v2379_v21, %v2622_v2 }
  0x25   : > { %4623 = vst [vmem:[#allocation36_spill] sm:$0xff] %v2603_v50  ;;  %4624 = vst [vmem:[#allocation37_spill] sm:$0xff] %v2606_v43  ;;  %v2647_v59 = vld [vmem:[%s2363_s8 + $0x91] sm:$0xff]  ;;  %v2660_v13 = vld [vmem:[%s2363_s8 + $0x99] sm:$0xff]  ;;  %v425_v50 = vmul.f32 %v2379_v21, %v2625_v1 }
  0x26   : > { %4625 = vst [vmem:[#allocation38_spill] sm:$0xff] %v2611_v6  ;;  %4626 = vst [vmem:[#allocation39_spill] sm:$0xff] %v2622_v2  ;;  %v2634_v6 = vmul.f32 %v2371_v14, %v2398_v31  ;;  %v2657_v31 = vmul.f32 %v2371_v14, %v2416_v37  ;;  %v2666_v28 = vld [vmem:[%s2363_s8 + $0xb1] sm:$0xff]  ;;  %v2675_v37 = vadd.f32 %v417_v25, %v2404_v33  ;;  %v2681_v53 = vld [vmem:[%s2363_s8 + $0xc9] sm:$0xff] }
  0x27   : > { %4627 = vst [vmem:[#allocation40_spill] sm:$0xff] %v2625_v1  ;;  %4628 = vst [vmem:[#allocation41_spill] sm:$0xff] %v2628_v15  ;;  %v2684_v52 = vld [vmem:[%s2363_s8 + $0xd9] sm:$0xff]  ;;  %v2693_v33 = vadd.f32 %v418_v36, %v2407_v34  ;;  %v2696_v25 = vld [vmem:[%s2363_s8 + $0xe1] sm:$0xff]  ;;  %v427_v2 = vmul.f32 %v2379_v21, %v2641_v18  ;;  %v428_v1 = vmul.f32 %v2379_v21, %v2644_v60 }
  0x28   : > { %4629 = vst [vmem:[#allocation42_spill] sm:$0xff] %v2634_v6  ;;  %4630 = vst [vmem:[#allocation43_spill] sm:$0xff] %v2641_v18  ;;  %v2663_v6 = vld [vmem:[%s2363_s8 + $0xa9] sm:$0xff]  ;;  %v2699_v51 = vld [vmem:[%s2363_s8 + $0xf1] sm:$0xff]  ;;  %v2711_v34 = vadd.f32 %v419_v30, %v2410_v35  ;;  %v430_v18 = vmul.f32 %v2379_v21, %v2660_v13  ;;  %v2729_v35 = vadd.f32 %v420_v24, %v2425_v40 }
  0x29   : > { %4631 = vst [vmem:[#allocation44_spill] sm:$0xff] %v2644_v60  ;;  %4632 = vst [vmem:[#allocation45_spill] sm:$0xff] %v2647_v59  ;;  %v2702_v46 = vld [vmem:[%s2363_s8 + $0xf9] sm:$0xff]  ;;  %v2714_v36 = vld [vmem:[%s2363_s8 + $0x109] sm:$0xff]  ;;  %v431_v60 = vmul.f32 %v2379_v21, %v2663_v6 }
  0x2a   : > { %4633 = vst [vmem:[#allocation46_spill] sm:$0xff] %v2653_v58  ;;  %4634 = vst [vmem:[#allocation47_spill] sm:$0xff] %v2657_v31  ;;  %v423_v58 = vmul.f32 %v2379_v21, %v2606_v43  ;;  %v2678_v31 = vld [vmem:[%s2363_s8 + $0xc1] sm:$0xff]  ;;  %v426_v43 = vmul.f32 %v2379_v21, %v2628_v15  ;;  %v429_v15 = vmul.f32 %v2379_v21, %v2647_v59  ;;  %v2717_v45 = vld [vmem:[%s2363_s8 + $0x111] sm:$0xff] }
  0x2b   : > { %4635 = vst [vmem:[#allocation48_spill] sm:$0xff] %v2660_v13  ;;  %4636 = vst [vmem:[#allocation49_spill] sm:$0xff] %v2663_v6  ;;  %v2720_v44 = vld [vmem:[%s2363_s8 + $0x121] sm:$0xff]  ;;  %v432_v59 = vmul.f32 %v2379_v21, %v2666_v28  ;;  %v2732_v30 = vld [vmem:[%s2363_s8 + $0x129] sm:$0xff]  ;;  %v433_v38 = vmul.f32 %v2379_v21, %v2678_v31  ;;  %v434_v13 = vmul.f32 %v2379_v21, %v2681_v53 }
  0x2c   : > { %4637 = vst [vmem:[#allocation50_spill] sm:$0xff] %v2666_v28  ;;  %4638 = vst [vmem:[#allocation51_spill] sm:$0xff] %v2678_v31  ;;  %v2735_v39 = vld [vmem:[%s2363_s8 + $0x139] sm:$0xff]  ;;  %v2738_v14 = vld [vmem:[%s2363_s8 + $0x141] sm:$0xff]  ;;  %v435_v6 = vmul.f32 %v2379_v21, %v2684_v52  ;;  %v2747_v28 = vadd.f32 %v421_v7, %v2428_v41  ;;  %v437_v31 = vmul.f32 %v2379_v21, %v2699_v51 }
  0x2d   : > { %4639 = vst [vmem:[#allocation52_spill] sm:$0xff] %v2681_v53  ;;  %4640 = vst [vmem:[#allocation53_spill] sm:$0xff] %v2684_v52  ;;  %v2750_v40 = vld [vmem:[%s2363_s8 + $0x151] sm:$0xff]  ;;  %v2753_v24 = vld [vmem:[%s2363_s8 + $0x159] sm:$0xff]  ;;  %v438_v53 = vmul.f32 %v2379_v21, %v2702_v46  ;;  %v2765_v52 = vadd.f32 %v422_v32, %v2431_v42  ;;  %v439_v7 = vmul.f32 %v2379_v21, %v2714_v36 }
  0x2e   : > { %4641 = vst [vmem:[#allocation54_spill] sm:$0xff] %v2693_v33  ;;  %4642 = vst [vmem:[#allocation55_spill] sm:$0xff] %v2696_v25  ;;  %v2768_v41 = vld [vmem:[%s2363_s8 + $0x171] sm:$0xff]  ;;  %v2777_v33 = vadd.f32 %v423_v58, %v2446_v47  ;;  %v443_v42 = vmul.f32 %v2379_v21, %v2735_v39  ;;  %v444_v32 = vmul.f32 %v2379_v21, %v2738_v14 }
  0x2f   : > { %4643 = vst [vmem:[#allocation56_spill] sm:$0xff] %v2699_v51  ;;  %4644 = vst [vmem:[#allocation57_spill] sm:$0xff] %v2702_v46  ;;  %v442_v46 = vmul.f32 %v2379_v21, %v2732_v30  ;;  %v445_v47 = vmul.f32 %v2379_v21, %v2750_v40  ;;  %v446_v58 = vmul.f32 %v2379_v21, %v2753_v24  ;;  %v2982_v51 = vld [vmem:[%s2363_s8 + $0x15a] sm:$0xff] }
  0x30   : > { %4645 = vst [vmem:[#allocation58_spill] sm:$0xff] %v2711_v34  ;;  %4646 = vst [vmem:[#allocation59_spill] sm:$0xff] %v2714_v36  ;;  %v436_v34 = vmul.f32 %v2379_v21, %v2696_v25  ;;  %v441_v25 = vmul.f32 %v2379_v21, %v2720_v44 }
  0x31   : > { %4647 = vst [vmem:[#allocation60_spill] sm:$0xff] %v2717_v45  ;;  %4648 = vst [vmem:[#allocation61_spill] sm:$0xff] %v2720_v44  ;;  %v2971_v44 = vld [vmem:[%s2363_s8 + $0x152] sm:$0xff] }
  0x32   : > { %4649 = vst [vmem:[#allocation62_spill] sm:$0xff] %v2729_v35  ;;  %4650 = vst [vmem:[#allocation63_spill] sm:$0xff] %v2732_v30  ;;  %v2756_v35 = vld [vmem:[%s2363_s8 + $0x169] sm:$0xff] }
  0x33   : > { %4651 = vst [vmem:[#allocation64_spill] sm:$0xff] %v2735_v39  ;;  %4652 = vst [vmem:[#allocation65_spill] sm:$0xff] %v2738_v14  ;;  %v447_v30 = vmul.f32 %v2379_v21, %v2756_v35  ;;  %v2795_v39 = vadd.f32 %v425_v50, %v2452_v49  ;;  %v448_v14 = vmul.f32 %v2379_v21, %v2768_v41  ;;  %v481_v50 = vld [vmem:[%s2363_s8 + $0x2] sm:$0xff] }
  0x34   : > { %4653 = vst [vmem:[#allocation66_spill] sm:$0xff] %v2747_v28  ;;  %4654 = vst [vmem:[#allocation67_spill] sm:$0xff] %v2750_v40  ;;  %v440_v28 = vmul.f32 %v2379_v21, %v2717_v45  ;;  %v2786_v45 = vadd.f32 %v424_v57, %v2449_v48  ;;  %v2800_v48 = vadd.f32 %v426_v43, %v2467_v54  ;;  %v482_v54 = vld [vmem:[%s2363_s8 + $0xa] sm:$0xff]  ;;  %v2968_v40 = vld [vmem:[%s2363_s8 + $0x142] sm:$0xff] }
  0x35   : > { %4655 = vst [vmem:[#allocation68_spill] sm:$0xff] %v2753_v24  ;;  %4656 = vst [vmem:[#allocation69_spill] sm:$0xff] %v2756_v35  ;;  %v2803_v57 = vadd.f32 %v427_v2, %v2471_v55  ;;  %v2806_v24 = vadd.f32 %v428_v1, %v2475_v56  ;;  %v2809_v35 = vadd.f32 %v429_v15, %v2491_v61  ;;  %v2823_v55 = vld [vmem:[%s2363_s8 + $0x1a] sm:$0xff]  ;;  %v2826_v56 = vld [vmem:[%s2363_s8 + $0x22] sm:$0xff] }
  0x36   : > { %4657 = vst [vmem:[#allocation70_spill] sm:$0xff] %v2768_v41  ;;  %v2812_v49 = vadd.f32 %v430_v18, %v2495_v62  ;;  %v2815_v21 = vadd.f32 %v431_v60, %v2499_v63  ;;  %v2818_v43 = vadd.f32 %v432_v59, %v2512_v3  ;;  %4658 = vst [vmem:[#allocation71_spill] sm:$0xff] %v2823_v55  ;;  %v2841_v63 = vld [vmem:[%s2363_s8 + $0x32] sm:$0xff]  ;;  %v2844_v1 = vld [vmem:[%s2363_s8 + $0x3a] sm:$0xff] }
  0x37   : > { %4659 = vst [vmem:[#allocation72_spill] sm:$0xff] %v2826_v56  ;;  %v2829_v61 = vadd.f32 %v433_v38, %v2516_v4  ;;  %v2832_v62 = vadd.f32 %v434_v13, %v2520_v5  ;;  %v2835_v60 = vadd.f32 %v435_v6, %v2534_v10  ;;  %v2838_v59 = vadd.f32 %v436_v34, %v2538_v11  ;;  %v2847_v2 = vld [vmem:[%s2363_s8 + $0x4a] sm:$0xff]  ;;  %v2850_v38 = vld [vmem:[%s2363_s8 + $0x52] sm:$0xff]  ;;  %v2865_v11 = vld [vmem:[%s2363_s8 + $0x62] sm:$0xff] }
  0x38   : > { %4660 = vst [vmem:[#allocation73_spill] sm:$0xff] %v2841_v63  ;;  %4661 = vst [vmem:[#allocation74_spill] sm:$0xff] %v2844_v1  ;;  %v2853_v3 = vadd.f32 %v437_v31, %v2542_v12  ;;  %v2856_v4 = vadd.f32 %v438_v53, %v2556_v19  ;;  %v2859_v5 = vadd.f32 %v439_v7, %v2560_v20  ;;  %v2868_v18 = vld [vmem:[%s2363_s8 + $0x6a] sm:$0xff]  ;;  %v2871_v6 = vld [vmem:[%s2363_s8 + $0x7a] sm:$0xff] }
  0x39   : > { %4662 = vst [vmem:[#allocation75_spill] sm:$0xff] %v2847_v2  ;;  %4663 = vst [vmem:[#allocation76_spill] sm:$0xff] %v2850_v38  ;;  %v2862_v10 = vadd.f32 %v440_v28, %v2564_v23  ;;  %v2874_v53 = vadd.f32 %v441_v25, %v2577_v27  ;;  %v2877_v12 = vadd.f32 %v442_v46, %v2581_v26  ;;  %v2886_v20 = vld [vmem:[%s2363_s8 + $0x82] sm:$0xff]  ;;  %v2889_v23 = vld [vmem:[%s2363_s8 + $0x92] sm:$0xff] }
  0x3a   : > { %4664 = vst [vmem:[#allocation77_spill] sm:$0xff] %v2856_v4  ;;  %4665 = vst [vmem:[#allocation78_spill] sm:$0xff] %v2859_v5  ;;  %v2880_v28 = vadd.f32 %v443_v42, %v2585_v16  ;;  %v2883_v19 = vadd.f32 %v444_v32, %v2593_v29  ;;  %v2892_v15 = vld [vmem:[%s2363_s8 + $0x9a] sm:$0xff]  ;;  %v2895_v27 = vadd.f32 %v445_v47, %v2597_v0  ;;  %v2907_v16 = vld [vmem:[%s2363_s8 + $0xaa] sm:$0xff] }
  0x3b   : > { %4666 = vst [vmem:[#allocation79_spill] sm:$0xff] %v2862_v10  ;;  %4667 = vst [vmem:[#allocation80_spill] sm:$0xff] %v2865_v11  ;;  %v2898_v26 = vadd.f32 %v446_v58, %v2615_v8  ;;  %v2901_v46 = vadd.f32 %v447_v30, %v2619_v9  ;;  %v2904_v29 = vadd.f32 %v448_v14, %v2638_v17  ;;  %v2910_v31 = vld [vmem:[%s2363_s8 + $0xb2] sm:$0xff]  ;;  %v2913_v13 = vld [vmem:[%s2363_s8 + $0xc2] sm:$0xff] }
  0x3c   : > { %4668 = vst [vmem:[#allocation81_spill] sm:$0xff] %v2868_v18  ;;  %4669 = vst [vmem:[#allocation82_spill] sm:$0xff] %v2871_v6  ;;  %v2916_v0 = vld [vmem:[%s2363_s8 + $0xca] sm:$0xff]  ;;  %v2919_v25 = vld [vmem:[%s2363_s8 + $0xda] sm:$0xff]  ;;  %v517_v9 = vmul.f32 %v2381_v22, %v481_v50  ;;  %v518_v14 = vmul.f32 %v2381_v22, %v482_v54  ;;  %v519_v17 = vmul.f32 %v2381_v22, %v2823_v55 }
  0x3d   : > { %4670 = vst [vmem:[#allocation83_spill] sm:$0xff] %v2874_v53  ;;  %4671 = vst [vmem:[#allocation84_spill] sm:$0xff] %v2877_v12  ;;  %v2922_v8 = vld [vmem:[%s2363_s8 + $0xe2] sm:$0xff]  ;;  %v520_v34 = vmul.f32 %v2381_v22, %v2826_v56  ;;  %v2931_v30 = vld [vmem:[%s2363_s8 + $0xf2] sm:$0xff]  ;;  %v521_v32 = vmul.f32 %v2381_v22, %v2841_v63  ;;  %v522_v47 = vmul.f32 %v2381_v22, %v2844_v1 }
  0x3e   : > { %4672 = vst [vmem:[#allocation85_spill] sm:$0xff] %v2880_v28  ;;  %4673 = vst [vmem:[#allocation86_spill] sm:$0xff] %v2883_v19  ;;  %v2934_v7 = vld [vmem:[%s2363_s8 + $0xfa] sm:$0xff]  ;;  %v2937_v42 = vld [vmem:[%s2363_s8 + $0x10a] sm:$0xff]  ;;  %v523_v58 = vmul.f32 %v2381_v22, %v2847_v2  ;;  %v524_v50 = vmul.f32 %v2381_v22, %v2850_v38  ;;  %v525_v63 = vmul.f32 %v2381_v22, %v2865_v11 }
  0x3f   : > { %4674 = vst [vmem:[#allocation87_spill] sm:$0xff] %v2886_v20  ;;  %4675 = vst [vmem:[#allocation88_spill] sm:$0xff] %v2889_v23  ;;  %v2948_v54 = vld [vmem:[%s2363_s8 + $0x112] sm:$0xff]  ;;  %v2951_v56 = vld [vmem:[%s2363_s8 + $0x122] sm:$0xff]  ;;  %v526_v1 = vmul.f32 %v2381_v22, %v2868_v18  ;;  %v527_v2 = vmul.f32 %v2381_v22, %v2871_v6  ;;  %v528_v38 = vmul.f32 %v2381_v22, %v2886_v20 }
  0x40   : > { %4676 = vst [vmem:[#allocation89_spill] sm:$0xff] %v2892_v15  ;;  %4677 = vst [vmem:[#allocation90_spill] sm:$0xff] %v2895_v27  ;;  %v2954_v55 = vld [vmem:[%s2363_s8 + $0x12a] sm:$0xff]  ;;  %v2965_v41 = vld [vmem:[%s2363_s8 + $0x13a] sm:$0xff]  ;;  %v529_v36 = vmul.f32 %v2381_v22, %v2889_v23  ;;  %v530_v11 = vmul.f32 %v2381_v22, %v2892_v15  ;;  %v531_v18 = vmul.f32 %v2381_v22, %v2907_v16 }
  0x41   : > { %4678 = vst [vmem:[#allocation91_spill] sm:$0xff] %v2898_v26  ;;  %4679 = vst [vmem:[#allocation92_spill] sm:$0xff] %v2901_v46  ;;  %v532_v6 = vmul.f32 %v2381_v22, %v2910_v31  ;;  %v2985_v20 = vld [vmem:[%s2363_s8 + $0x16a] sm:$0xff]  ;;  %v533_v46 = vmul.f32 %v2381_v22, %v2913_v13  ;;  %v534_v23 = vmul.f32 %v2381_v22, %v2916_v0  ;;  %v4699_v19 = vld [vmem:[#allocation54_spill] sm:$0xff] }
  0x42   : > { %4680 = vst [vmem:[#allocation93_spill] sm:$0xff] %v2904_v29  ;;  %4681 = vst [vmem:[#allocation94_spill] sm:$0xff] %v2907_v16  ;;  %v2988_v29 = vld [vmem:[%s2363_s8 + $0x172] sm:$0xff]  ;;  %v535_v15 = vmul.f32 %v2381_v22, %v2919_v25  ;;  %v536_v16 = vmul.f32 %v2381_v22, %v2922_v8  ;;  %v538_v26 = vmul.f32 %v2381_v22, %v2934_v7  ;;  %v4701_v53 = vld [vmem:[#allocation62_spill] sm:$0xff] }
  0x43   : > { %4682 = vst [vmem:[#allocation95_spill] sm:$0xff] %v2910_v31  ;;  %4683 = vst [vmem:[#allocation96_spill] sm:$0xff] %v2913_v13  ;;  %v537_v31 = vmul.f32 %v2381_v22, %v2931_v30  ;;  %v539_v27 = vmul.f32 %v2381_v22, %v2937_v42  ;;  %v540_v13 = vmul.f32 %v2381_v22, %v2948_v54  ;;  %v4702_v10 = vld [vmem:[#allocation66_spill] sm:$0xff] }
  0x44   : > { %4684 = vst [vmem:[#allocation97_spill] sm:$0xff] %v2916_v0  ;;  %4685 = vst [vmem:[#allocation98_spill] sm:$0xff] %v2919_v25  ;;  %v541_v0 = vmul.f32 %v2381_v22, %v2951_v56  ;;  %v542_v25 = vmul.f32 %v2381_v22, %v2954_v55  ;;  %v550_v28 = vadd.f32 %v518_v14, %v4699_v19 }
  0x45   : > { %4686 = vst [vmem:[#allocation99_spill] sm:$0xff] %v2922_v8  ;;  %4687 = vst [vmem:[#allocation100_spill] sm:$0xff] %v2931_v30  ;;  %v543_v8 = vmul.f32 %v2381_v22, %v2965_v41  ;;  %v544_v30 = vmul.f32 %v2381_v22, %v2968_v40  ;;  %v553_v5 = vadd.f32 %v521_v32, %v4702_v10  ;;  %v4723_v32 = vld [vmem:[#allocation16_spill] sm:$0xff] }
  0x46   : > { %4688 = vst [vmem:[#allocation101_spill] sm:$0xff] %v2934_v7  ;;  %4689 = vst [vmem:[#allocation102_spill] sm:$0xff] %v2937_v42  ;;  %v545_v7 = vmul.f32 %v2381_v22, %v2971_v44  ;;  %v546_v42 = vmul.f32 %v2381_v22, %v2982_v51  ;;  %v556_v4 = vadd.f32 %v524_v50, %v2786_v45 }
  0x47   : > { %4690 = vst [vmem:[#allocation103_spill] sm:$0xff] %v2948_v54  ;;  %4691 = vst [vmem:[#allocation104_spill] sm:$0xff] %v2951_v56  ;;  %v547_v54 = vmul.f32 %v2381_v22, %v2985_v20  ;;  %v548_v56 = vmul.f32 %v2381_v22, %v2988_v29  ;;  %v558_v22 = vadd.f32 %v526_v1, %v2800_v48  ;;  %v4706_v1 = vld [vmem:[#allocation83_spill] sm:$0xff] }
  0x48   : > { %4692 = vst [vmem:[#allocation105_spill] sm:$0xff] %v2954_v55  ;;  %4693 = vst [vmem:[#allocation106_spill] sm:$0xff] %v2965_v41  ;;  %v549_v55 = vadd.f32 %v517_v9, %v2675_v37  ;;  %v4700_v41 = vld [vmem:[#allocation58_spill] sm:$0xff]  ;;  %v559_v37 = vadd.f32 %v527_v2, %v2803_v57  ;;  %v560_v19 = vadd.f32 %v528_v38, %v2806_v24  ;;  %v4707_v2 = vld [vmem:[#allocation84_spill] sm:$0xff] }
  0x49   : > { %4694 = vst [vmem:[#allocation107_spill] sm:$0xff] %v2968_v40  ;;  %4695 = vst [vmem:[#allocation108_spill] sm:$0xff] %v2971_v44  ;;  %v551_v12 = vadd.f32 %v519_v17, %v4700_v41  ;;  %v552_v40 = vadd.f32 %v520_v34, %v4701_v53  ;;  %v554_v44 = vadd.f32 %v522_v47, %v2765_v52  ;;  %v4708_v38 = vld [vmem:[#allocation85_spill] sm:$0xff]  ;;  %v4717_v9 = vld [vmem:[#allocation11_spill] sm:$0xff] }
  0x4a   : > { %4696 = vst [vmem:[#allocation109_spill] sm:$0xff] %v2982_v51  ;;  %4697 = vst [vmem:[#allocation110_spill] sm:$0xff] %v2985_v20  ;;  %v555_v51 = vadd.f32 %v523_v58, %v2777_v33  ;;  %v557_v20 = vadd.f32 %v525_v63, %v2795_v39  ;;  %v561_v41 = vadd.f32 %v529_v36, %v2809_v35  ;;  %v4703_v63 = vld [vmem:[#allocation77_spill] sm:$0xff]  ;;  %v4704_v36 = vld [vmem:[#allocation78_spill] sm:$0xff] }
  0x4b   : > { %4698 = vst [vmem:[#allocation111_spill] sm:$0xff] %v2988_v29  ;;  %v562_v53 = vadd.f32 %v530_v11, %v2812_v49  ;;  %v563_v10 = vadd.f32 %v531_v18, %v2815_v21  ;;  %v564_v52 = vadd.f32 %v532_v6, %v2818_v43  ;;  %v565_v33 = vadd.f32 %v533_v46, %v2829_v61  ;;  %v4705_v49 = vld [vmem:[#allocation79_spill] sm:$0xff]  ;;  %v4709_v11 = vld [vmem:[#allocation86_spill] sm:$0xff]  ;;  %v4724_v58 = vld [vmem:[#allocation17_spill] sm:$0xff] }
  0x4c   : > { %v566_v45 = vadd.f32 %v534_v23, %v2832_v62  ;;  %v567_v39 = vadd.f32 %v535_v15, %v2835_v60  ;;  %v568_v48 = vadd.f32 %v536_v16, %v2838_v59  ;;  %v569_v57 = vadd.f32 %v537_v31, %v2853_v3  ;;  %v4710_v18 = vld [vmem:[#allocation90_spill] sm:$0xff]  ;;  %v4711_v6 = vld [vmem:[#allocation91_spill] sm:$0xff]  ;;  %v4712_v23 = vld [vmem:[#allocation92_spill] sm:$0xff] }
  0x4d   : > { %v570_v24 = vadd.f32 %v538_v26, %v4703_v63  ;;  %v571_v35 = vadd.f32 %v539_v27, %v4704_v36  ;;  %v572_v21 = vadd.f32 %v540_v13, %v4705_v49  ;;  %v573_v43 = vadd.f32 %v541_v0, %v4706_v1  ;;  %v4713_v26 = vld [vmem:[#allocation93_spill] sm:$0xff]  ;;  %v4714_v16 = vld [vmem:[#allocation8_spill] sm:$0xff]  ;;  %v4715_v27 = vld [vmem:[#allocation2_spill] sm:$0xff] }
  0x4e   : > { %v574_v61 = vadd.f32 %v542_v25, %v4707_v2  ;;  %v575_v62 = vadd.f32 %v543_v8, %v4708_v38  ;;  %v576_v60 = vadd.f32 %v544_v30, %v4709_v11  ;;  %v577_v59 = vadd.f32 %v545_v7, %v4710_v18  ;;  %v4716_v13 = vld [vmem:[#allocation9_spill] sm:$0xff]  ;;  %v4718_v8 = vld [vmem:[#allocation12_spill] sm:$0xff]  ;;  %v3063_v17 = vld [vmem:[%s2363_s8 + $0x180] sm:$0xff] }
  0x4f   : > { %v578_v3 = vadd.f32 %v546_v42, %v4711_v6  ;;  %v579_v15 = vadd.f32 %v547_v54, %v4712_v23  ;;  %v580_v46 = vadd.f32 %v548_v56, %v4713_v26  ;;  %v630_v31 = vmul.f32 %v4715_v27, %v4714_v16  ;;  %4719 = vst [vmem:[#allocation54_spill] sm:$0xff] %v3063_v17  ;;  %v3066_v34 = vld [vmem:[%s2363_s8 + $0x188] sm:$0xff]  ;;  %v4721_v30 = vld [vmem:[#allocation13_spill] sm:$0xff]  ;;  %v4726_v36 = vld [vmem:[#allocation20_spill] sm:$0xff] }
  0x50   : > { %v631_v0 = vmul.f32 %v4715_v27, %v4716_v13  ;;  %v632_v25 = vmul.f32 %v4715_v27, %v4717_v9  ;;  %v633_v14 = vmul.f32 %v4715_v27, %v4718_v8  ;;  %4720 = vst [vmem:[#allocation58_spill] sm:$0xff] %v3066_v34  ;;  %v634_v7 = vmul.f32 %v4715_v27, %v4721_v30  ;;  %v4722_v56 = vld [vmem:[#allocation15_spill] sm:$0xff]  ;;  %v4727_v1 = vld [vmem:[#allocation21_spill] sm:$0xff]  ;;  %v4729_v18 = vld [vmem:[#allocation24_spill] sm:$0xff] }
  0x51   : > { %v635_v42 = vmul.f32 %v4715_v27, %v4722_v56  ;;  %v636_v47 = vmul.f32 %v4715_v27, %v4723_v32  ;;  %v637_v50 = vmul.f32 %v4715_v27, %v4724_v58  ;;  %v4725_v54 = vld [vmem:[#allocation19_spill] sm:$0xff]  ;;  %v639_v49 = vmul.f32 %v4715_v27, %v4726_v36  ;;  %v4730_v23 = vld [vmem:[#allocation26_spill] sm:$0xff]  ;;  %v4732_v9 = vld [vmem:[#allocation29_spill] sm:$0xff] }
  0x52   : > { %v638_v63 = vmul.f32 %v4715_v27, %v4725_v54  ;;  %v640_v2 = vmul.f32 %v4715_v27, %v4727_v1  ;;  %v4728_v38 = vld [vmem:[#allocation23_spill] sm:$0xff]  ;;  %v642_v6 = vmul.f32 %v4715_v27, %v4729_v18  ;;  %v643_v26 = vmul.f32 %v4715_v27, %v4730_v23  ;;  %v4733_v30 = vld [vmem:[#allocation30_spill] sm:$0xff]  ;;  %v4734_v32 = vld [vmem:[#allocation33_spill] sm:$0xff] }
  0x53   : > { %v641_v11 = vmul.f32 %v4715_v27, %v4728_v38  ;;  %v4731_v16 = vld [vmem:[#allocation27_spill] sm:$0xff]  ;;  %v645_v8 = vmul.f32 %v4715_v27, %v4732_v9  ;;  %v646_v56 = vmul.f32 %v4715_v27, %v4733_v30  ;;  %v647_v58 = vmul.f32 %v4715_v27, %v4734_v32  ;;  %v4737_v18 = vld [vmem:[#allocation10_spill] sm:$0xff] }
  0x54   : > { %v644_v13 = vmul.f32 %v4715_v27, %v4731_v16  ;;  %v648_v54 = vmul.f32 %v3063_v17, %v4715_v27  ;;  %v649_v36 = vmul.f32 %v3066_v34, %v4715_v27  ;;  %v4735_v1 = vld [vmem:[#allocation7_spill] sm:$0xff]  ;;  %v3104_v23 = vadd.f32 %v4737_v18, %v550_v28  ;;  %v4739_v16 = vld [vmem:[#allocation14_spill] sm:$0xff]  ;;  %v4742_v27 = vld [vmem:[#allocation25_spill] sm:$0xff] }
  0x55   : > { %v3101_v38 = vadd.f32 %v4735_v1, %v549_v55  ;;  %v3107_v9 = vadd.f32 %v4739_v16, %v551_v12  ;;  %v4740_v29 = vld [vmem:[#allocation18_spill] sm:$0xff]  ;;  %v3116_v34 = vadd.f32 %v4742_v27, %v554_v44  ;;  %v4743_v1 = vld [vmem:[#allocation28_spill] sm:$0xff]  ;;  %v3136_v44 = vadd.f32 %v630_v31, %v561_v41  ;;  %v4758_v31 = vld [vmem:[#allocation3_spill] sm:$0xff] }
  0x56   : > { %4738 = vst [vmem:[#allocation66_spill] sm:$0xff] %v3104_v23  ;;  %v3110_v30 = vadd.f32 %v4740_v29, %v552_v40  ;;  %v4741_v32 = vld [vmem:[#allocation22_spill] sm:$0xff]  ;;  %v3119_v55 = vadd.f32 %v4743_v1, %v555_v51  ;;  %v3138_v27 = vadd.f32 %v631_v0, %v562_v53  ;;  %v3140_v51 = vadd.f32 %v632_v25, %v563_v10  ;;  %v4763_v25 = vld [vmem:[#allocation39_spill] sm:$0xff] }
  0x57   : > { %4736 = vst [vmem:[#allocation62_spill] sm:$0xff] %v3101_v38  ;;  %v3113_v17 = vadd.f32 %v4741_v32, %v553_v5  ;;  %v4744_v38 = vld [vmem:[#allocation32_spill] sm:$0xff]  ;;  %v4745_v28 = vld [vmem:[#allocation38_spill] sm:$0xff]  ;;  %v4748_v5 = vld [vmem:[#allocation47_spill] sm:$0xff]  ;;  %v3150_v1 = vadd.f32 %v637_v50, %v568_v48  ;;  %v3156_v41 = vadd.f32 %v640_v2, %v571_v35  ;;  %v3158_v53 = vadd.f32 %v641_v11, %v572_v21 }
  0x58   : > { %v3122_v18 = vadd.f32 %v4744_v38, %v556_v4  ;;  %v3125_v23 = vadd.f32 %v4745_v28, %v557_v20  ;;  %v4746_v12 = vld [vmem:[#allocation42_spill] sm:$0xff]  ;;  %v3134_v32 = vadd.f32 %v4748_v5, %v560_v19  ;;  %v3142_v4 = vadd.f32 %v633_v14, %v564_v52  ;;  %v4757_v35 = vld [vmem:[#allocation31_spill] sm:$0xff]  ;;  %v4764_v14 = vld [vmem:[#allocation40_spill] sm:$0xff] }
  0x59   : > { %v3128_v16 = vadd.f32 %v4746_v12, %v558_v22  ;;  %v4747_v40 = vld [vmem:[#allocation46_spill] sm:$0xff]  ;;  %v3144_v38 = vadd.f32 %v634_v7, %v565_v33  ;;  %v3146_v20 = vadd.f32 %v635_v42, %v566_v45  ;;  %v3148_v22 = vadd.f32 %v636_v47, %v567_v39  ;;  %v4765_v42 = vld [vmem:[#allocation41_spill] sm:$0xff]  ;;  %v4766_v50 = vld [vmem:[#allocation43_spill] sm:$0xff] }
  0x5a   : > { %v3131_v29 = vadd.f32 %v4747_v40, %v559_v37  ;;  %v3152_v37 = vadd.f32 %v638_v63, %v569_v57  ;;  %v3154_v19 = vadd.f32 %v639_v49, %v570_v24  ;;  %v3160_v10 = vadd.f32 %v642_v6, %v573_v43  ;;  %v4759_v0 = vld [vmem:[#allocation34_spill] sm:$0xff]  ;;  %v4767_v49 = vld [vmem:[#allocation44_spill] sm:$0xff]  ;;  %v4768_v11 = vld [vmem:[#allocation45_spill] sm:$0xff] }
  0x5b   : > { %v3162_v52 = vadd.f32 %v643_v26, %v574_v61  ;;  %v3164_v33 = vadd.f32 %v644_v13, %v575_v62  ;;  %v3166_v45 = vadd.f32 %v645_v8, %v576_v60  ;;  %v3168_v39 = vadd.f32 %v646_v56, %v577_v59  ;;  %v4760_v61 = vld [vmem:[#allocation35_spill] sm:$0xff]  ;;  %v4761_v60 = vld [vmem:[#allocation36_spill] sm:$0xff]  ;;  %v4770_v8 = vld [vmem:[#allocation49_spill] sm:$0xff] }
  0x5c   : > { %4749 = vst [vmem:[#allocation77_spill] sm:$0xff] %v3160_v10  ;;  %v3170_v48 = vadd.f32 %v647_v58, %v578_v3  ;;  %v3172_v57 = vadd.f32 %v648_v54, %v579_v15  ;;  %v3174_v24 = vadd.f32 %v649_v36, %v580_v46  ;;  %v718_v21 = vmul.f32 %v4758_v31, %v4757_v35  ;;  %v4762_v3 = vld [vmem:[#allocation37_spill] sm:$0xff]  ;;  %v4769_v26 = vld [vmem:[#allocation48_spill] sm:$0xff]  ;;  %v4771_v58 = vld [vmem:[#allocation50_spill] sm:$0xff] }
  0x5d   : > { %4750 = vst [vmem:[#allocation78_spill] sm:$0xff] %v3162_v52  ;;  %4751 = vst [vmem:[#allocation79_spill] sm:$0xff] %v3164_v33  ;;  %v719_v43 = vmul.f32 %v4758_v31, %v4759_v0  ;;  %v720_v62 = vmul.f32 %v4758_v31, %v4760_v61  ;;  %v721_v59 = vmul.f32 %v4758_v31, %v4761_v60  ;;  %v4772_v36 = vld [vmem:[#allocation51_spill] sm:$0xff]  ;;  %v4773_v12 = vld [vmem:[#allocation52_spill] sm:$0xff] }
  0x5e   : > { %4752 = vst [vmem:[#allocation83_spill] sm:$0xff] %v3166_v45  ;;  %4753 = vst [vmem:[#allocation84_spill] sm:$0xff] %v3168_v39  ;;  %v722_v15 = vmul.f32 %v4758_v31, %v4762_v3  ;;  %v723_v46 = vmul.f32 %v4758_v31, %v4763_v25  ;;  %v724_v7 = vmul.f32 %v4758_v31, %v4764_v14  ;;  %v3209_v5 = vld [vmem:[%s2363_s8 + $0x181] sm:$0xff]  ;;  %v3212_v35 = vld [vmem:[%s2363_s8 + $0x189] sm:$0xff] }
  0x5f   : > { %4754 = vst [vmem:[#allocation85_spill] sm:$0xff] %v3170_v48  ;;  %4755 = vst [vmem:[#allocation86_spill] sm:$0xff] %v3172_v57  ;;  %v725_v47 = vmul.f32 %v4758_v31, %v4765_v42  ;;  %v726_v63 = vmul.f32 %v4758_v31, %v4766_v50  ;;  %v727_v2 = vmul.f32 %v4758_v31, %v4767_v49  ;;  %v4776_v0 = vld [vmem:[#allocation53_spill] sm:$0xff]  ;;  %v4777_v60 = vld [vmem:[#allocation55_spill] sm:$0xff] }
  0x60   : > { %4756 = vst [vmem:[#allocation90_spill] sm:$0xff] %v3174_v24  ;;  %v728_v6 = vmul.f32 %v4758_v31, %v4768_v11  ;;  %v729_v13 = vmul.f32 %v4758_v31, %v4769_v26  ;;  %v730_v56 = vmul.f32 %v4758_v31, %v4770_v8  ;;  %v731_v54 = vmul.f32 %v4758_v31, %v4771_v58  ;;  %v4778_v25 = vld [vmem:[#allocation56_spill] sm:$0xff]  ;;  %v4779_v42 = vld [vmem:[#allocation57_spill] sm:$0xff]  ;;  %v4780_v49 = vld [vmem:[#allocation59_spill] sm:$0xff] }
  0x61   : > { %v732_v28 = vmul.f32 %v4758_v31, %v4772_v36  ;;  %v733_v40 = vmul.f32 %v4758_v31, %v4773_v12  ;;  %4774 = vst [vmem:[#allocation91_spill] sm:$0xff] %v3209_v5  ;;  %4775 = vst [vmem:[#allocation92_spill] sm:$0xff] %v3212_v35  ;;  %v734_v61 = vmul.f32 %v4758_v31, %v4776_v0  ;;  %v4781_v26 = vld [vmem:[#allocation60_spill] sm:$0xff]  ;;  %v4782_v58 = vld [vmem:[#allocation61_spill] sm:$0xff] }
  0x62   : > { %v735_v3 = vmul.f32 %v4758_v31, %v4777_v60  ;;  %v736_v14 = vmul.f32 %v4758_v31, %v4778_v25  ;;  %v737_v50 = vmul.f32 %v4758_v31, %v4779_v42  ;;  %v738_v11 = vmul.f32 %v4758_v31, %v4780_v49  ;;  %v4783_v12 = vld [vmem:[#allocation63_spill] sm:$0xff]  ;;  %v4784_v24 = vld [vmem:[#allocation64_spill] sm:$0xff]  ;;  %v4785_v57 = vld [vmem:[#allocation65_spill] sm:$0xff] }
  0x63   : > { %v739_v8 = vmul.f32 %v4758_v31, %v4781_v26  ;;  %v740_v36 = vmul.f32 %v4758_v31, %v4782_v58  ;;  %v741_v0 = vmul.f32 %v4758_v31, %v4783_v12  ;;  %v742_v60 = vmul.f32 %v4758_v31, %v4784_v24  ;;  %v4786_v48 = vld [vmem:[#allocation67_spill] sm:$0xff]  ;;  %v4787_v39 = vld [vmem:[#allocation68_spill] sm:$0xff]  ;;  %v4788_v45 = vld [vmem:[#allocation69_spill] sm:$0xff] }
  0x64   : > { %v743_v25 = vmul.f32 %v4758_v31, %v4785_v57  ;;  %v744_v42 = vmul.f32 %v4758_v31, %v4786_v48  ;;  %v745_v49 = vmul.f32 %v4758_v31, %v4787_v39  ;;  %v746_v26 = vmul.f32 %v4758_v31, %v4788_v45  ;;  %v4789_v33 = vld [vmem:[#allocation70_spill] sm:$0xff] }
  0x65   : > { %v747_v58 = vmul.f32 %v4758_v31, %v4789_v33  ;;  %v748_v12 = vmul.f32 %v3209_v5, %v4758_v31  ;;  %v749_v24 = vmul.f32 %v3212_v35, %v4758_v31  ;;  %v4790_v52 = vld [vmem:[#allocation62_spill] sm:$0xff]  ;;  %v3253_v39 = vadd.f32 %v720_v62, %v3107_v9  ;;  %v4833_v35 = vld [vmem:[#allocation104_spill] sm:$0xff] }
  0x66   : > { %v3247_v57 = vadd.f32 %v718_v21, %v4790_v52  ;;  %v4791_v10 = vld [vmem:[#allocation66_spill] sm:$0xff]  ;;  %v3256_v45 = vadd.f32 %v721_v59, %v3110_v30  ;;  %v3259_v33 = vadd.f32 %v722_v15, %v3113_v17  ;;  %v3262_v5 = vadd.f32 %v723_v46, %v3116_v34 }
  0x67   : > { %v3250_v48 = vadd.f32 %v719_v43, %v4791_v10  ;;  %v3265_v31 = vadd.f32 %v724_v7, %v3119_v55  ;;  %v3268_v52 = vadd.f32 %v725_v47, %v3122_v18  ;;  %v3271_v10 = vadd.f32 %v726_v63, %v3125_v23  ;;  %v4806_v47 = vld [vmem:[#allocation90_spill] sm:$0xff] }
  0x68   : > { %v3274_v9 = vadd.f32 %v727_v2, %v3128_v16  ;;  %v3277_v30 = vadd.f32 %v728_v6, %v3131_v29  ;;  %v3280_v17 = vadd.f32 %v729_v13, %v3134_v32  ;;  %v3283_v34 = vadd.f32 %v730_v56, %v3136_v44  ;;  %v4808_v2 = vld [vmem:[#allocation71_spill] sm:$0xff]  ;;  %v4809_v6 = vld [vmem:[#allocation4_spill] sm:$0xff] }
  0x69   : > { %v3286_v55 = vadd.f32 %v731_v54, %v3138_v27  ;;  %v3289_v18 = vadd.f32 %v732_v28, %v3140_v51  ;;  %v3292_v23 = vadd.f32 %v733_v40, %v3142_v4  ;;  %v3295_v16 = vadd.f32 %v734_v61, %v3144_v38  ;;  %v4810_v56 = vld [vmem:[#allocation72_spill] sm:$0xff]  ;;  %v4811_v28 = vld [vmem:[#allocation73_spill] sm:$0xff]  ;;  %v4812_v61 = vld [vmem:[#allocation74_spill] sm:$0xff] }
  0x6a   : > { %v3298_v29 = vadd.f32 %v735_v3, %v3146_v20  ;;  %v3301_v32 = vadd.f32 %v736_v14, %v3148_v22  ;;  %v3304_v44 = vadd.f32 %v737_v50, %v3150_v1  ;;  %v3307_v27 = vadd.f32 %v738_v11, %v3152_v37  ;;  %v4792_v20 = vld [vmem:[#allocation77_spill] sm:$0xff]  ;;  %v4794_v22 = vld [vmem:[#allocation78_spill] sm:$0xff]  ;;  %v4796_v1 = vld [vmem:[#allocation79_spill] sm:$0xff] }
  0x6b   : > { %v3310_v51 = vadd.f32 %v739_v8, %v3154_v19  ;;  %v3313_v4 = vadd.f32 %v740_v36, %v3156_v41  ;;  %v3316_v38 = vadd.f32 %v741_v0, %v3158_v53  ;;  %v3319_v21 = vadd.f32 %v742_v60, %v4792_v20  ;;  %v4798_v37 = vld [vmem:[#allocation83_spill] sm:$0xff]  ;;  %v4800_v19 = vld [vmem:[#allocation84_spill] sm:$0xff]  ;;  %v4802_v41 = vld [vmem:[#allocation85_spill] sm:$0xff] }
  0x6c   : > { %v3322_v43 = vadd.f32 %v743_v25, %v4794_v22  ;;  %v3325_v62 = vadd.f32 %v744_v42, %v4796_v1  ;;  %v3328_v59 = vadd.f32 %v745_v49, %v4798_v37  ;;  %v3331_v15 = vadd.f32 %v746_v26, %v4800_v19  ;;  %v4804_v53 = vld [vmem:[#allocation86_spill] sm:$0xff]  ;;  %v4813_v14 = vld [vmem:[#allocation75_spill] sm:$0xff]  ;;  %v4814_v11 = vld [vmem:[#allocation76_spill] sm:$0xff] }
  0x6d   : > { %4793 = vst [vmem:[#allocation93_spill] sm:$0xff] %v3319_v21  ;;  %v3334_v46 = vadd.f32 %v747_v58, %v4802_v41  ;;  %v3337_v7 = vadd.f32 %v748_v12, %v4804_v53  ;;  %v3340_v63 = vadd.f32 %v749_v24, %v4806_v47  ;;  %v818_v13 = vmul.f32 %v4809_v6, %v4808_v2  ;;  %v4815_v36 = vld [vmem:[#allocation80_spill] sm:$0xff]  ;;  %v4816_v60 = vld [vmem:[#allocation81_spill] sm:$0xff]  ;;  %v4817_v42 = vld [vmem:[#allocation82_spill] sm:$0xff] }
  0x6e   : > { %4795 = vst [vmem:[#allocation8_spill] sm:$0xff] %v3322_v43  ;;  %4797 = vst [vmem:[#allocation2_spill] sm:$0xff] %v3325_v62  ;;  %v819_v54 = vmul.f32 %v4809_v6, %v4810_v56  ;;  %v820_v40 = vmul.f32 %v4809_v6, %v4811_v28  ;;  %v821_v3 = vmul.f32 %v4809_v6, %v4812_v61  ;;  %v4818_v26 = vld [vmem:[#allocation87_spill] sm:$0xff]  ;;  %v4819_v12 = vld [vmem:[#allocation88_spill] sm:$0xff] }
  0x6f   : > { %4799 = vst [vmem:[#allocation9_spill] sm:$0xff] %v3328_v59  ;;  %4801 = vst [vmem:[#allocation11_spill] sm:$0xff] %v3331_v15  ;;  %v822_v50 = vmul.f32 %v4809_v6, %v4813_v14  ;;  %v823_v8 = vmul.f32 %v4809_v6, %v4814_v11  ;;  %v824_v0 = vmul.f32 %v4809_v6, %v4815_v36  ;;  %v4820_v20 = vld [vmem:[#allocation89_spill] sm:$0xff]  ;;  %v4821_v1 = vld [vmem:[#allocation94_spill] sm:$0xff] }
  0x70   : > { %4803 = vst [vmem:[#allocation12_spill] sm:$0xff] %v3334_v46  ;;  %4805 = vst [vmem:[#allocation13_spill] sm:$0xff] %v3337_v7  ;;  %v825_v25 = vmul.f32 %v4809_v6, %v4816_v60  ;;  %v826_v49 = vmul.f32 %v4809_v6, %v4817_v42  ;;  %v827_v58 = vmul.f32 %v4809_v6, %v4818_v26  ;;  %v4822_v19 = vld [vmem:[#allocation95_spill] sm:$0xff]  ;;  %v4823_v53 = vld [vmem:[#allocation96_spill] sm:$0xff] }
  0x71   : > { %4807 = vst [vmem:[#allocation15_spill] sm:$0xff] %v3340_v63  ;;  %v828_v24 = vmul.f32 %v4809_v6, %v4819_v12  ;;  %v829_v22 = vmul.f32 %v4809_v6, %v4820_v20  ;;  %v830_v37 = vmul.f32 %v4809_v6, %v4821_v1  ;;  %v831_v41 = vmul.f32 %v4809_v6, %v4822_v19  ;;  %v4824_v2 = vld [vmem:[#allocation97_spill] sm:$0xff]  ;;  %v3375_v28 = vld [vmem:[%s2363_s8 + $0x182] sm:$0xff]  ;;  %v3378_v61 = vld [vmem:[%s2363_s8 + $0x18a] sm:$0xff] }
  0x72   : > { %v832_v47 = vmul.f32 %v4809_v6, %v4823_v53  ;;  %v833_v56 = vmul.f32 %v4809_v6, %v4824_v2  ;;  %4825 = vst [vmem:[#allocation16_spill] sm:$0xff] %v3375_v28  ;;  %4826 = vst [vmem:[#allocation17_spill] sm:$0xff] %v3378_v61  ;;  %v4827_v14 = vld [vmem:[#allocation98_spill] sm:$0xff]  ;;  %v4828_v36 = vld [vmem:[#allocation99_spill] sm:$0xff]  ;;  %v840_v63 = vmul.f32 %v4809_v6, %v4833_v35 }
  0x73   : > { %v834_v11 = vmul.f32 %v4809_v6, %v4827_v14  ;;  %v835_v60 = vmul.f32 %v4809_v6, %v4828_v36  ;;  %v4829_v42 = vld [vmem:[#allocation100_spill] sm:$0xff]  ;;  %v4830_v12 = vld [vmem:[#allocation101_spill] sm:$0xff]  ;;  %v4831_v1 = vld [vmem:[#allocation102_spill] sm:$0xff] }
  0x74   : > { %v836_v26 = vmul.f32 %v4809_v6, %v4829_v42  ;;  %v837_v20 = vmul.f32 %v4809_v6, %v4830_v12  ;;  %v838_v19 = vmul.f32 %v4809_v6, %v4831_v1  ;;  %v4832_v53 = vld [vmem:[#allocation103_spill] sm:$0xff]  ;;  %v4834_v7 = vld [vmem:[#allocation105_spill] sm:$0xff]  ;;  %v4835_v46 = vld [vmem:[#allocation106_spill] sm:$0xff] }
  0x75   : > { %v839_v2 = vmul.f32 %v4809_v6, %v4832_v53  ;;  %v841_v14 = vmul.f32 %v4809_v6, %v4834_v7  ;;  %v842_v36 = vmul.f32 %v4809_v6, %v4835_v46  ;;  %v4836_v15 = vld [vmem:[#allocation107_spill] sm:$0xff]  ;;  %v4837_v59 = vld [vmem:[#allocation108_spill] sm:$0xff]  ;;  %v4838_v62 = vld [vmem:[#allocation109_spill] sm:$0xff]  ;;  %v848_v7 = vmul.f32 %v3375_v28, %v4809_v6 }
  0x76   : > { %v843_v42 = vmul.f32 %v4809_v6, %v4836_v15  ;;  %v844_v12 = vmul.f32 %v4809_v6, %v4837_v59  ;;  %v845_v1 = vmul.f32 %v4809_v6, %v4838_v62  ;;  %v4839_v43 = vld [vmem:[#allocation110_spill] sm:$0xff]  ;;  %v4840_v21 = vld [vmem:[#allocation111_spill] sm:$0xff]  ;;  %v849_v46 = vmul.f32 %v3378_v61, %v4809_v6 }
  0x77   : > { %v846_v53 = vmul.f32 %v4809_v6, %v4839_v43  ;;  %v847_v35 = vmul.f32 %v4809_v6, %v4840_v21  ;;  %v3413_v15 = vadd.f32 %v818_v13, %v3247_v57  ;;  %v3416_v59 = vadd.f32 %v819_v54, %v3250_v48  ;;  %v2067_v13 = vld [vmem:[%s2363_s8 + $0x48] sm:$0xff]  ;;  %v2088_v61 = vld [vmem:[%s2363_s8 + $0x140] sm:$0xff] }
  0x78   : > { %v3419_v62 = vadd.f32 %v820_v40, %v3253_v39  ;;  %v3422_v43 = vadd.f32 %v821_v3, %v3256_v45  ;;  %v3425_v21 = vadd.f32 %v822_v50, %v3259_v33  ;;  %v3428_v28 = vadd.f32 %v823_v8, %v3262_v5  ;;  %v2070_v40 = vld [vmem:[%s2363_s8 + $0x68] sm:$0xff]  ;;  %v2071_v3 = vld [vmem:[%s2363_s8 + $0x78] sm:$0xff]  ;;  %v4847_v8 = vld [vmem:[#allocation8_spill] sm:$0xff] }
  0x79   : > { %v3431_v57 = vadd.f32 %v824_v0, %v3265_v31  ;;  %v3434_v48 = vadd.f32 %v825_v25, %v3268_v52  ;;  %v3437_v39 = vadd.f32 %v826_v49, %v3271_v10  ;;  %v3440_v45 = vadd.f32 %v827_v58, %v3274_v9  ;;  %v4845_v50 = vld [vmem:[#allocation93_spill] sm:$0xff]  ;;  %v2072_v25 = vld [vmem:[%s2363_s8 + $0x80] sm:$0xff]  ;;  %v2073_v49 = vld [vmem:[%s2363_s8 + $0x90] sm:$0xff] }
  0x7a   : > { %v3443_v33 = vadd.f32 %v828_v24, %v3277_v30  ;;  %v3446_v5 = vadd.f32 %v829_v22, %v3280_v17  ;;  %v3449_v31 = vadd.f32 %v830_v37, %v3283_v34  ;;  %v3452_v52 = vadd.f32 %v831_v41, %v3286_v55  ;;  %v2065_v30 = vld [vmem:[%s2363_s8 + $0x30] sm:$0xff]  ;;  %v4851_v0 = vld [vmem:[#allocation9_spill] sm:$0xff]  ;;  %v4853_v24 = vld [vmem:[#allocation11_spill] sm:$0xff] }
  0x7b   : > { %v3455_v10 = vadd.f32 %v832_v47, %v3289_v18  ;;  %v3458_v9 = vadd.f32 %v833_v56, %v3292_v23  ;;  %v3462_v6 = vadd.f32 %v834_v11, %v3295_v16  ;;  %v3465_v17 = vadd.f32 %v835_v60, %v3298_v29  ;;  %v2066_v18 = vld [vmem:[%s2363_s8 + $0x38] sm:$0xff]  ;;  %v2068_v23 = vld [vmem:[%s2363_s8 + $0x50] sm:$0xff]  ;;  %v4859_v11 = vld [vmem:[#allocation15_spill] sm:$0xff] }
  0x7c   : > { %v3468_v34 = vadd.f32 %v836_v26, %v3301_v32  ;;  %v3471_v55 = vadd.f32 %v837_v20, %v3304_v44  ;;  %v3477_v54 = vadd.f32 %v838_v19, %v3307_v27  ;;  %v3480_v16 = vadd.f32 %v839_v2, %v3310_v51  ;;  %v2069_v44 = vld [vmem:[%s2363_s8 + $0x60] sm:$0xff]  ;;  %v2074_v58 = vld [vmem:[%s2363_s8 + $0x98] sm:$0xff]  ;;  %v4855_v37 = vld [vmem:[#allocation12_spill] sm:$0xff] }
  0x7d   : > { %v3483_v29 = vadd.f32 %v840_v63, %v3313_v4  ;;  %v3486_v32 = vadd.f32 %v841_v14, %v3316_v38  ;;  %v3492_v27 = vadd.f32 %v842_v36, %v4845_v50  ;;  %v3495_v51 = vadd.f32 %v843_v42, %v4847_v8  ;;  %v4849_v4 = vld [vmem:[#allocation2_spill] sm:$0xff]  ;;  %v4857_v47 = vld [vmem:[#allocation13_spill] sm:$0xff]  ;;  %v2075_v26 = vld [vmem:[%s2363_s8 + $0xa8] sm:$0xff] }
  0x7e   : > { %4841 = vst [vmem:[#allocation19_spill] sm:$0xff] %v3477_v54  ;;  %4842 = vst [vmem:[#allocation20_spill] sm:$0xff] %v3480_v16  ;;  %v3498_v63 = vadd.f32 %v844_v12, %v4849_v4  ;;  %v3501_v38 = vadd.f32 %v845_v1, %v4851_v0  ;;  %v3507_v22 = vadd.f32 %v846_v53, %v4853_v24  ;;  %v2076_v20 = vld [vmem:[%s2363_s8 + $0xb0] sm:$0xff]  ;;  %v2077_v19 = vld [vmem:[%s2363_s8 + $0xc0] sm:$0xff] }
  0x7f   : > { %4843 = vst [vmem:[#allocation21_spill] sm:$0xff] %v3483_v29  ;;  %4844 = vst [vmem:[#allocation23_spill] sm:$0xff] %v3486_v32  ;;  %v3510_v41 = vadd.f32 %v847_v35, %v4855_v37  ;;  %v3513_v56 = vadd.f32 %v848_v7, %v4857_v47  ;;  %v3516_v60 = vadd.f32 %v849_v46, %v4859_v11  ;;  %v2078_v2 = vld [vmem:[%s2363_s8 + $0xc8] sm:$0xff]  ;;  %v2079_v14 = vld [vmem:[%s2363_s8 + $0xd8] sm:$0xff] }
  0x80   : > { %4846 = vst [vmem:[#allocation24_spill] sm:$0xff] %v3492_v27  ;;  %4848 = vst [vmem:[#allocation26_spill] sm:$0xff] %v3495_v51  ;;  %v2080_v36 = vld [vmem:[%s2363_s8 + $0xe0] sm:$0xff]  ;;  %v4861_v42 = vld [vmem:[#allocation5_spill] sm:$0xff] }
  0x81   : > { %4850 = vst [vmem:[#allocation27_spill] sm:$0xff] %v3498_v63  ;;  %4852 = vst [vmem:[#allocation29_spill] sm:$0xff] %v3501_v38  ;;  %v919_v12 = vmul.f32 %v2065_v30, %v4861_v42  ;;  %v920_v1 = vmul.f32 %v2066_v18, %v4861_v42  ;;  %v921_v53 = vmul.f32 %v2067_v13, %v4861_v42  ;;  %v2081_v7 = vld [vmem:[%s2363_s8 + $0xf0] sm:$0xff]  ;;  %v2098_v13 = vld [vmem:[%s2363_s8 + $0x39] sm:$0xff] }
  0x82   : > { %4854 = vst [vmem:[#allocation30_spill] sm:$0xff] %v3507_v22  ;;  %4856 = vst [vmem:[#allocation33_spill] sm:$0xff] %v3510_v41  ;;  %v922_v35 = vmul.f32 %v2068_v23, %v4861_v42  ;;  %v923_v46 = vmul.f32 %v2069_v44, %v4861_v42  ;;  %v3531_v50 = vmul.f32 %v2070_v40, %v4861_v42  ;;  %v2097_v18 = vld [vmem:[%s2363_s8 + $0x31] sm:$0xff]  ;;  %v2083_v23 = vld [vmem:[%s2363_s8 + $0x108] sm:$0xff] }
  0x83   : > { %4858 = vst [vmem:[#allocation7_spill] sm:$0xff] %v3513_v56  ;;  %4860 = vst [vmem:[#allocation10_spill] sm:$0xff] %v3516_v60  ;;  %v3534_v8 = vmul.f32 %v2071_v3, %v4861_v42  ;;  %v3537_v30 = vmul.f32 %v2072_v25, %v4861_v42  ;;  %v2082_v4 = vld [vmem:[%s2363_s8 + $0xf8] sm:$0xff]  ;;  %v3544_v0 = vmul.f32 %v2073_v49, %v4861_v42  ;;  %v2099_v25 = vld [vmem:[%s2363_s8 + $0x49] sm:$0xff] }
  0x84   : > { %v3547_v44 = vmul.f32 %v2074_v58, %v4861_v42  ;;  %v3550_v40 = vmul.f32 %v2075_v26, %v4861_v42  ;;  %v3553_v3 = vmul.f32 %v2076_v20, %v4861_v42  ;;  %v2084_v24 = vld [vmem:[%s2363_s8 + $0x110] sm:$0xff]  ;;  %v2085_v37 = vld [vmem:[%s2363_s8 + $0x120] sm:$0xff]  ;;  %v2086_v47 = vld [vmem:[%s2363_s8 + $0x128] sm:$0xff]  ;;  %v3560_v11 = vmul.f32 %v2077_v19, %v4861_v42 }
  0x85   : > { %v3563_v49 = vmul.f32 %v2078_v2, %v4861_v42  ;;  %v3566_v58 = vmul.f32 %v2079_v14, %v4861_v42  ;;  %v3569_v26 = vmul.f32 %v2080_v36, %v4861_v42  ;;  %v2087_v20 = vld [vmem:[%s2363_s8 + $0x138] sm:$0xff]  ;;  %v951_v60 = vadd.f32 %v919_v12, %v3413_v15  ;;  %v4862_v41 = vld [vmem:[#allocation6_spill] sm:$0xff]  ;;  %v3581_v14 = vld [vmem:[%s4492_s1 + $0x8] ss:$0 sm:$0xff] }
  0x86   : > { %v952_v56 = vadd.f32 %v920_v1, %v3416_v59  ;;  %v2100_v19 = vld [vmem:[%s2363_s8 + $0x51] sm:$0xff]  ;;  %v1019_v22 = vmul.f32 %v2097_v18, %v4862_v41  ;;  %v1020_v2 = vmul.f32 %v2098_v13, %v4862_v41  ;;  %v3585_v15 = vmul.f32 %v2081_v7, %v4861_v42  ;;  %v2101_v1 = vld [vmem:[%s2363_s8 + $0x61] sm:$0xff]  ;;  %v2102_v29 = vld [vmem:[%s2363_s8 + $0x69] sm:$0xff] }
  0x87   : > { %v2089_v36 = vld [vmem:[%s2363_s8 + $0x150] sm:$0xff]  ;;  %v3588_v59 = vmul.f32 %v2082_v4, %v4861_v42  ;;  %v953_v12 = vadd.f32 %v921_v53, %v3419_v62  ;;  %v1021_v18 = vmul.f32 %v2099_v25, %v4862_v41  ;;  %v3594_v13 = vmul.f32 %v2083_v23, %v4861_v42  ;;  %v2130_v62 = vld [vmem:[%s2363_s8 + $0x3a] sm:$0xff]  ;;  %v2091_v25 = vld [vmem:[%s2363_s8 + $0x168] sm:$0xff] }
  0x88   : > { %v3597_v38 = vmul.f32 %v2084_v24, %v4861_v42  ;;  %v3600_v63 = vmul.f32 %v2085_v37, %v4861_v42  ;;  %v3603_v7 = vmul.f32 %v2086_v47, %v4861_v42  ;;  %v2129_v4 = vld [vmem:[%s2363_s8 + $0x32] sm:$0xff]  ;;  %v2131_v53 = vld [vmem:[%s2363_s8 + $0x4a] sm:$0xff]  ;;  %v3612_v23 = vmul.f32 %v2087_v20, %v4861_v42 }
  0x89   : > { %v2090_v51 = vld [vmem:[%s2363_s8 + $0x158] sm:$0xff]  ;;  %v2092_v27 = vld [vmem:[%s2363_s8 + $0x170] sm:$0xff]  ;;  %v3615_v24 = vmul.f32 %v2088_v61, %v4861_v42  ;;  %v954_v37 = vadd.f32 %v922_v35, %v3422_v43  ;;  %v1022_v32 = vmul.f32 %v2100_v19, %v4862_v41  ;;  %v955_v47 = vadd.f32 %v923_v46, %v3425_v21 }
  0x8a   : > { %4863 = vst [vmem:[#allocation14_spill] sm:$0xff] %v3600_v63  ;;  %4864 = vst [vmem:[#allocation18_spill] sm:$0xff] %v3603_v7  ;;  %v1023_v7 = vmul.f32 %v2101_v1, %v4862_v41  ;;  %v1051_v16 = vadd.f32 %v1019_v22, %v951_v60  ;;  %v1052_v63 = vadd.f32 %v1020_v2, %v952_v56  ;;  %v2132_v54 = vld [vmem:[%s2363_s8 + $0x52] sm:$0xff]  ;;  %v2133_v60 = vld [vmem:[%s2363_s8 + $0x62] sm:$0xff] }
  0x8b   : > { %4865 = vst [vmem:[#allocation22_spill] sm:$0xff] %v3612_v23  ;;  %v2103_v20 = vld [vmem:[%s2363_s8 + $0x79] sm:$0xff]  ;;  %v1053_v23 = vadd.f32 %v1021_v18, %v953_v12  ;;  %v1119_v61 = vmul.f32 %v3581_v14, %v2129_v4  ;;  %v1120_v43 = vmul.f32 %v3581_v14, %v2130_v62  ;;  %v1121_v35 = vmul.f32 %v3581_v14, %v2131_v53 }
  0x8c   : > { %v3628_v19 = vmul.f32 %v2089_v36, %v4861_v42  ;;  %v3631_v21 = vmul.f32 %v2090_v51, %v4861_v42  ;;  %v3634_v22 = vmul.f32 %v2091_v25, %v4861_v42  ;;  %v3637_v56 = vmul.f32 %v2092_v27, %v4861_v42  ;;  %v2095_v46 = vld [vmem:[%s2363_s8 + $0x198] sm:$0xff]  ;;  %v2096_v2 = vld [vmem:[%s2363_s8 + $0x1a0] sm:$0xff] }
  0x8d   : > { %v956_v12 = vadd.f32 %v3531_v50, %v3428_v28  ;;  %v1024_v36 = vmul.f32 %v2102_v29, %v4862_v41  ;;  %v1054_v1 = vadd.f32 %v1022_v32, %v954_v37  ;;  %v1122_v51 = vmul.f32 %v3581_v14, %v2132_v54  ;;  %v4867_v18 = vld [vmem:[#allocation54_spill] sm:$0xff]  ;;  %v2105_v28 = vld [vmem:[%s2363_s8 + $0x91] sm:$0xff] }
  0x8e   : > { %4866 = vst [vmem:[#allocation25_spill] sm:$0xff] %v3637_v56  ;;  %v3648_v4 = vmul.f32 %v4867_v18, %v4861_v42  ;;  %v957_v62 = vadd.f32 %v3534_v8, %v3431_v57  ;;  %v2104_v27 = vld [vmem:[%s2363_s8 + $0x81] sm:$0xff]  ;;  %v1025_v53 = vmul.f32 %v2103_v20, %v4862_v41  ;;  %v1055_v25 = vadd.f32 %v1023_v7, %v955_v47  ;;  %v2134_v56 = vld [vmem:[%s2363_s8 + $0x6a] sm:$0xff] }
  0x8f   : > { %v2135_v50 = vld [vmem:[%s2363_s8 + $0x7a] sm:$0xff]  ;;  %v1123_v29 = vmul.f32 %v3581_v14, %v2133_v60  ;;  %v1151_v32 = vadd.f32 %v1119_v61, %v1051_v16  ;;  %v1152_v54 = vadd.f32 %v1120_v43, %v1052_v63  ;;  %v1153_v37 = vadd.f32 %v1121_v35, %v1053_v23  ;;  %v2107_v23 = vld [vmem:[%s2363_s8 + $0xa9] sm:$0xff] }
  0x90   : > { %4868 = vst [vmem:[#allocation28_spill] sm:$0xff] %v3648_v4  ;;  %v4869_v18 = vld [vmem:[#allocation58_spill] sm:$0xff]  ;;  %v3663_v57 = vmul.f32 %v2095_v46, %v4861_v42  ;;  %v3666_v8 = vmul.f32 %v2096_v2, %v4861_v42  ;;  %v958_v7 = vadd.f32 %v3537_v30, %v3434_v48  ;;  %v1026_v47 = vmul.f32 %v2104_v27, %v4862_v41  ;;  %v2137_v46 = vld [vmem:[%s2363_s8 + $0x92] sm:$0xff] }
  0x91   : > { %v3660_v4 = vmul.f32 %v4869_v18, %v4861_v42  ;;  %v3673_v16 = vld [vmem:[%s4493_s2] ss:$0 sm:$0xff]  ;;  %v1056_v20 = vadd.f32 %v1024_v36, %v956_v12  ;;  %v1124_v61 = vmul.f32 %v3581_v14, %v2134_v56  ;;  %v1154_v43 = vadd.f32 %v1122_v51, %v1054_v1  ;;  %v2136_v30 = vld [vmem:[%s2363_s8 + $0x82] sm:$0xff]  ;;  %v2108_v51 = vld [vmem:[%s2363_s8 + $0xb1] sm:$0xff] }
  0x92   : > { %v2106_v63 = vld [vmem:[%s2363_s8 + $0x99] sm:$0xff]  ;;  %v959_v42 = vadd.f32 %v3544_v0, %v3437_v39  ;;  %v1027_v35 = vmul.f32 %v2105_v28, %v4862_v41  ;;  %v1057_v48 = vadd.f32 %v1025_v53, %v957_v62  ;;  %v1125_v60 = vmul.f32 %v3581_v14, %v2135_v50 }
  0x93   : > { %v1155_v2 = vadd.f32 %v1123_v29, %v1055_v25  ;;  %v3686_v18 = vadd.f32 %v3673_v16, %v1151_v32  ;;  %v3689_v12 = vadd.f32 %v3673_v16, %v1152_v54  ;;  %v3692_v56 = vadd.f32 %v3673_v16, %v1153_v37  ;;  %v2138_v50 = vld [vmem:[%s2363_s8 + $0x9a] sm:$0xff] }
  0x94   : > { %v960_v39 = vadd.f32 %v3547_v44, %v3440_v45  ;;  %v961_v0 = vadd.f32 %v3550_v40, %v3443_v33  ;;  %v1028_v36 = vmul.f32 %v2106_v63, %v4862_v41  ;;  %v1029_v1 = vmul.f32 %v2107_v23, %v4862_v41  ;;  %v2109_v33 = vld [vmem:[%s2363_s8 + $0xc1] sm:$0xff]  ;;  %v2139_v23 = vld [vmem:[%s2363_s8 + $0xaa] sm:$0xff] }
  0x95   : > { %v1058_v62 = vadd.f32 %v1026_v47, %v958_v7  ;;  %v1126_v27 = vmul.f32 %v3581_v14, %v2136_v30  ;;  %v1156_v53 = vadd.f32 %v1124_v61, %v1056_v20  ;;  %v3703_v25 = vadd.f32 %v3673_v16, %v1154_v43  ;;  %v2110_v20 = vld [vmem:[%s2363_s8 + $0xc9] sm:$0xff]  ;;  %v2140_v30 = vld [vmem:[%s2363_s8 + $0xb2] sm:$0xff] }
  0x96   : > { %v1059_v28 = vadd.f32 %v1027_v35, %v959_v42  ;;  %v1127_v45 = vmul.f32 %v3581_v14, %v2137_v46  ;;  %v1157_v44 = vadd.f32 %v1125_v60, %v1057_v48  ;;  %v3709_v40 = vadd.f32 %v3673_v16, %v1155_v2  ;;  %v2111_v46 = vld [vmem:[%s2363_s8 + $0xd9] sm:$0xff] }
  0x97   : > { %v1223_v29 = vsel %vm1222_vm1, %v3686_v18, 0.0  ;;  %v1224_v32 = vsel %vm1222_vm1, %v3689_v12, 0.0  ;;  %v1226_v54 = vsel %vm1222_vm1, %v3692_v56, 0.0  ;;  %v962_v37 = vadd.f32 %v3553_v3, %v3446_v5 }
  0x98   : > { %v1030_v7 = vmul.f32 %v2108_v51, %v4862_v41  ;;  %v1060_v63 = vadd.f32 %v1028_v36, %v960_v39  ;;  %v1225_v47 = vadd.f32 %v1224_v32, %v1223_v29  ;;  %v1128_v61 = vmul.f32 %v3581_v14, %v2138_v50  ;;  %v2113_v32 = vld [vmem:[%s2363_s8 + $0xf1] sm:$0xff] }
  0x99   : > { %v1158_v43 = vadd.f32 %v1126_v27, %v1058_v62  ;;  %v3724_v42 = vadd.f32 %v3673_v16, %v1156_v53  ;;  %v1228_v35 = vsel %vm1222_vm1, %v3703_v25, 0.0  ;;  %v963_v5 = vadd.f32 %v3560_v11, %v3449_v31  ;;  %v2112_v27 = vld [vmem:[%s2363_s8 + $0xe1] sm:$0xff] }
  0x9a   : > { %v1031_v3 = vmul.f32 %v2109_v33, %v4862_v41  ;;  %v1061_v48 = vadd.f32 %v1029_v1, %v961_v0  ;;  %v1227_v60 = vadd.f32 %v1226_v54, %v1225_v47  ;;  %v1129_v2 = vmul.f32 %v3581_v14, %v2139_v23  ;;  %v2141_v1 = vld [vmem:[%s2363_s8 + $0xc2] sm:$0xff]  ;;  %v2142_v33 = vld [vmem:[%s2363_s8 + $0xca] sm:$0xff]  ;;  %v2143_v47 = vld [vmem:[%s2363_s8 + $0xda] sm:$0xff] }
  0x9b   : > { %v1159_v39 = vadd.f32 %v1127_v45, %v1059_v28  ;;  %v3735_v36 = vadd.f32 %v3673_v16, %v1157_v44  ;;  %v1230_v51 = vsel %vm1222_vm1, %v3709_v40, 0.0  ;;  %v964_v31 = vadd.f32 %v3563_v49, %v3452_v52 }
  0x9c   : > { %v1032_v11 = vmul.f32 %v2110_v20, %v4862_v41  ;;  %v1062_v0 = vadd.f32 %v1030_v7, %v962_v37  ;;  %v1229_v62 = vadd.f32 %v1228_v35, %v1227_v60  ;;  %v1130_v53 = vmul.f32 %v3581_v14, %v2140_v30  ;;  %v2144_v30 = vld [vmem:[%s2363_s8 + $0xe2] sm:$0xff] }
  0x9d   : > { %v1160_v28 = vadd.f32 %v1128_v61, %v1060_v63  ;;  %v3746_v50 = vadd.f32 %v3673_v16, %v1158_v43  ;;  %v1232_v45 = vsel %vm1222_vm1, %v3724_v42, 0.0  ;;  %v965_v52 = vadd.f32 %v3566_v58, %v3455_v10  ;;  %v2114_v61 = vld [vmem:[%s2363_s8 + $0xf9] sm:$0xff] }
  0x9e   : > { %v1033_v49 = vmul.f32 %v2111_v46, %v4862_v41  ;;  %v1063_v44 = vadd.f32 %v1031_v3, %v963_v5  ;;  %v1231_v29 = vadd.f32 %v1230_v51, %v1229_v62  ;;  %v1131_v54 = vmul.f32 %v3581_v14, %v2141_v1  ;;  %v2115_v46 = vld [vmem:[%s2363_s8 + $0x109] sm:$0xff]  ;;  %v2116_v62 = vld [vmem:[%s2363_s8 + $0x111] sm:$0xff] }
  0x9f   : > { %v1161_v37 = vadd.f32 %v1129_v2, %v1061_v48  ;;  %v3757_v7 = vadd.f32 %v3673_v16, %v1159_v39  ;;  %v1234_v63 = vsel %vm1222_vm1, %v3735_v36, 0.0  ;;  %v966_v10 = vadd.f32 %v3569_v26, %v3458_v9 }
  0xa0   : > { %v1034_v58 = vmul.f32 %v2112_v27, %v4862_v41  ;;  %v1064_v23 = vadd.f32 %v1032_v11, %v964_v31  ;;  %v1233_v20 = vadd.f32 %v1232_v45, %v1231_v29  ;;  %v1132_v43 = vmul.f32 %v3581_v14, %v2142_v33  ;;  %v2117_v33 = vld [vmem:[%s2363_s8 + $0x121] sm:$0xff] }
  0xa1   : > { %v1162_v35 = vadd.f32 %v1130_v53, %v1062_v0  ;;  %v3768_v5 = vadd.f32 %v3673_v16, %v1160_v28  ;;  %v1236_v3 = vsel %vm1222_vm1, %v3746_v50, 0.0  ;;  %v967_v9 = vadd.f32 %v3585_v15, %v3462_v6  ;;  %v2145_v0 = vld [vmem:[%s2363_s8 + $0xf2] sm:$0xff] }
  0xa2   : > { %v1035_v26 = vmul.f32 %v2113_v32, %v4862_v41  ;;  %v1065_v48 = vadd.f32 %v1033_v49, %v965_v52  ;;  %v1235_v60 = vadd.f32 %v1234_v63, %v1233_v20  ;;  %v1133_v2 = vmul.f32 %v3581_v14, %v2143_v47  ;;  %v2146_v49 = vld [vmem:[%s2363_s8 + $0xfa] sm:$0xff] }
  0xa3   : > { %v1163_v39 = vadd.f32 %v1131_v54, %v1063_v44  ;;  %v3779_v51 = vadd.f32 %v3673_v16, %v1161_v37  ;;  %v1238_v31 = vsel %vm1222_vm1, %v3757_v7, 0.0  ;;  %v968_v6 = vadd.f32 %v3588_v59, %v3465_v17 }
  0xa4   : > { %v1036_v15 = vmul.f32 %v2114_v61, %v4862_v41  ;;  %v1066_v11 = vadd.f32 %v1034_v58, %v966_v10  ;;  %v1237_v1 = vadd.f32 %v1236_v3, %v1235_v60  ;;  %v1134_v27 = vmul.f32 %v3581_v14, %v2144_v30  ;;  %v2147_v10 = vld [vmem:[%s2363_s8 + $0x10a] sm:$0xff]  ;;  %v4871_v3 = vld [vmem:[#allocation14_spill] sm:$0xff] }
  0xa5   : > { %v1164_v53 = vadd.f32 %v1132_v43, %v1064_v23  ;;  %v3790_v28 = vadd.f32 %v3673_v16, %v1162_v35  ;;  %v1240_v45 = vsel %vm1222_vm1, %v3768_v5, 0.0  ;;  %v969_v17 = vadd.f32 %v3594_v13, %v3468_v34  ;;  %v2118_v23 = vld [vmem:[%s2363_s8 + $0x129] sm:$0xff]  ;;  %v2119_v30 = vld [vmem:[%s2363_s8 + $0x139] sm:$0xff] }
  0xa6   : > { %v1037_v59 = vmul.f32 %v2115_v46, %v4862_v41  ;;  %v1067_v52 = vadd.f32 %v1035_v26, %v967_v9  ;;  %v1239_v44 = vadd.f32 %v1238_v31, %v1237_v1  ;;  %v1135_v29 = vmul.f32 %v3581_v14, %v2145_v0  ;;  %v4870_v35 = vld [vmem:[#allocation19_spill] sm:$0xff]  ;;  %v2148_v26 = vld [vmem:[%s2363_s8 + $0x112] sm:$0xff] }
  0xa7   : > { %v1165_v32 = vadd.f32 %v1133_v2, %v1065_v48  ;;  %v3801_v54 = vadd.f32 %v3673_v16, %v1163_v39  ;;  %v1242_v37 = vsel %vm1222_vm1, %v3779_v51, 0.0  ;;  %v970_v34 = vadd.f32 %v3597_v38, %v3471_v55  ;;  %v4872_v31 = vld [vmem:[#allocation20_spill] sm:$0xff]  ;;  %v2149_v1 = vld [vmem:[%s2363_s8 + $0x122] sm:$0xff] }
  0xa8   : > { %v1038_v13 = vmul.f32 %v2116_v62, %v4862_v41  ;;  %v1068_v63 = vadd.f32 %v1036_v15, %v968_v6  ;;  %v1241_v58 = vadd.f32 %v1240_v45, %v1239_v44  ;;  %v1136_v47 = vmul.f32 %v3581_v14, %v2146_v49  ;;  %v4873_v6 = vld [vmem:[#allocation18_spill] sm:$0xff] }
  0xa9   : > { %v1166_v20 = vadd.f32 %v1134_v27, %v1066_v11  ;;  %v3812_v61 = vadd.f32 %v3673_v16, %v1164_v53  ;;  %v1244_v43 = vsel %vm1222_vm1, %v3790_v28, 0.0  ;;  %v971_v55 = vadd.f32 %v4871_v3, %v4870_v35  ;;  %v2120_v27 = vld [vmem:[%s2363_s8 + $0x141] sm:$0xff] }
  0xaa   : > { %v1039_v38 = vmul.f32 %v2117_v33, %v4862_v41  ;;  %v1069_v9 = vadd.f32 %v1037_v59, %v969_v17  ;;  %v1243_v48 = vadd.f32 %v1242_v37, %v1241_v58  ;;  %v1137_v60 = vmul.f32 %v3581_v14, %v2147_v10  ;;  %v4875_v49 = vld [vmem:[#allocation22_spill] sm:$0xff] }
  0xab   : > { %v1167_v46 = vadd.f32 %v1135_v29, %v1067_v52  ;;  %v3823_v2 = vadd.f32 %v3673_v16, %v1165_v32  ;;  %v1246_v39 = vsel %vm1222_vm1, %v3801_v54, 0.0  ;;  %v972_v15 = vadd.f32 %v4873_v6, %v4872_v31  ;;  %v4874_v52 = vld [vmem:[#allocation21_spill] sm:$0xff]  ;;  %v2150_v32 = vld [vmem:[%s2363_s8 + $0x12a] sm:$0xff] }
  0xac   : > { %v1040_v11 = vmul.f32 %v2118_v23, %v4862_v41  ;;  %v1070_v0 = vadd.f32 %v1038_v13, %v970_v34  ;;  %v1245_v62 = vadd.f32 %v1244_v43, %v1243_v48  ;;  %v1138_v53 = vmul.f32 %v3581_v14, %v2148_v26  ;;  %v2121_v34 = vld [vmem:[%s2363_s8 + $0x151] sm:$0xff]  ;;  %v4876_v23 = vld [vmem:[#allocation23_spill] sm:$0xff]  ;;  %v2151_v35 = vld [vmem:[%s2363_s8 + $0x13a] sm:$0xff] }
  0xad   : > { %v1168_v45 = vadd.f32 %v1136_v47, %v1068_v63  ;;  %v3834_v17 = vadd.f32 %v3673_v16, %v1166_v20  ;;  %v1248_v59 = vsel %vm1222_vm1, %v3812_v61, 0.0  ;;  %v973_v44 = vadd.f32 %v4875_v49, %v4874_v52  ;;  %v2123_v6 = vld [vmem:[%s2363_s8 + $0x169] sm:$0xff]  ;;  %v2124_v52 = vld [vmem:[%s2363_s8 + $0x171] sm:$0xff] }
  0xae   : > { %v1041_v33 = vmul.f32 %v2119_v30, %v4862_v41  ;;  %v1071_v29 = vadd.f32 %v1039_v38, %v971_v55  ;;  %v1247_v37 = vadd.f32 %v1246_v39, %v1245_v62  ;;  %v1139_v13 = vmul.f32 %v3581_v14, %v2149_v1  ;;  %v2122_v55 = vld [vmem:[%s2363_s8 + $0x159] sm:$0xff]  ;;  %v4877_v30 = vld [vmem:[#allocation24_spill] sm:$0xff]  ;;  %v2152_v39 = vld [vmem:[%s2363_s8 + $0x142] sm:$0xff] }
  0xaf   : > { %v1169_v63 = vadd.f32 %v1137_v60, %v1069_v9  ;;  %v3845_v10 = vadd.f32 %v3673_v16, %v1167_v46  ;;  %v1250_v58 = vsel %vm1222_vm1, %v3823_v2, 0.0  ;;  %v974_v47 = vadd.f32 %v3615_v24, %v4876_v23  ;;  %v4878_v62 = vld [vmem:[#allocation26_spill] sm:$0xff] }
  0xb0   : > { %v1042_v20 = vmul.f32 %v2120_v27, %v4862_v41  ;;  %v1072_v43 = vadd.f32 %v1040_v11, %v972_v15  ;;  %v1249_v3 = vadd.f32 %v1248_v59, %v1247_v37  ;;  %v1140_v38 = vmul.f32 %v3581_v14, %v2150_v32  ;;  %v4879_v32 = vld [vmem:[#allocation27_spill] sm:$0xff] }
  0xb1   : > { %v1170_v9 = vadd.f32 %v1138_v53, %v1070_v0  ;;  %v3856_v26 = vadd.f32 %v3673_v16, %v1168_v45  ;;  %v1252_v48 = vsel %vm1222_vm1, %v3834_v17, 0.0  ;;  %v975_v24 = vadd.f32 %v3628_v19, %v4877_v30  ;;  %v2153_v45 = vld [vmem:[%s2363_s8 + $0x152] sm:$0xff] }
  0xb2   : > { %v1043_v60 = vmul.f32 %v2121_v34, %v4862_v41  ;;  %v1073_v46 = vadd.f32 %v1041_v33, %v973_v44  ;;  %v1251_v31 = vadd.f32 %v1250_v58, %v1249_v3  ;;  %v1141_v15 = vmul.f32 %v3581_v14, %v2151_v35  ;;  %v4881_v35 = vld [vmem:[#allocation25_spill] sm:$0xff] }
  0xb3   : > { %v1171_v11 = vadd.f32 %v1139_v13, %v1071_v29  ;;  %v3867_v0 = vadd.f32 %v3673_v16, %v1169_v63  ;;  %v1254_v1 = vsel %vm1222_vm1, %v3845_v10, 0.0  ;;  %v976_v27 = vadd.f32 %v3631_v21, %v4878_v62  ;;  %v2154_v13 = vld [vmem:[%s2363_s8 + $0x15a] sm:$0xff] }
  0xb4   : > { %v1044_v19 = vmul.f32 %v2122_v55, %v4862_v41  ;;  %v1074_v53 = vadd.f32 %v1042_v20, %v974_v47  ;;  %v1253_v59 = vadd.f32 %v1252_v48, %v1251_v31  ;;  %v1142_v49 = vmul.f32 %v3581_v14, %v2152_v39  ;;  %v4883_v39 = vld [vmem:[#allocation28_spill] sm:$0xff] }
  0xb5   : > { %v1172_v44 = vadd.f32 %v1140_v38, %v1072_v43  ;;  %v3878_v33 = vadd.f32 %v3673_v16, %v1170_v9  ;;  %v1256_v29 = vsel %vm1222_vm1, %v3856_v26, 0.0  ;;  %v977_v37 = vadd.f32 %v3634_v22, %v4879_v32  ;;  %v4880_v43 = vld [vmem:[#allocation29_spill] sm:$0xff]  ;;  %v2155_v38 = vld [vmem:[%s2363_s8 + $0x16a] sm:$0xff] }
  0xb6   : > { %v1045_v21 = vmul.f32 %v2123_v6, %v4862_v41  ;;  %v1075_v34 = vadd.f32 %v1043_v60, %v975_v24  ;;  %v1255_v63 = vadd.f32 %v1254_v1, %v1253_v59  ;;  %v1143_v58 = vmul.f32 %v3581_v14, %v2153_v45  ;;  %v4884_v6 = vld [vmem:[#allocation91_spill] sm:$0xff]  ;;  %v2156_v1 = vld [vmem:[%s2363_s8 + $0x172] sm:$0xff] }
  0xb7   : > { %v1173_v23 = vadd.f32 %v1141_v15, %v1073_v46  ;;  %v3888_v47 = vadd.f32 %v3673_v16, %v1171_v11  ;;  %v1258_v20 = vsel %vm1222_vm1, %v3867_v0, 0.0  ;;  %v978_v3 = vadd.f32 %v4881_v35, %v4880_v43  ;;  %v4882_v46 = vld [vmem:[#allocation30_spill] sm:$0xff] }
  0xb8   : > { %v1046_v22 = vmul.f32 %v2124_v52, %v4862_v41  ;;  %v1076_v55 = vadd.f32 %v1044_v19, %v976_v27  ;;  %v1257_v9 = vadd.f32 %v1256_v29, %v1255_v63  ;;  %v1144_v48 = vmul.f32 %v3581_v14, %v2154_v13  ;;  %v2127_v27 = vld [vmem:[%s2363_s8 + $0x199] sm:$0xff] }
  0xb9   : > { %v1174_v30 = vadd.f32 %v1142_v49, %v1074_v53  ;;  %v3898_v24 = vadd.f32 %v3673_v16, %v1172_v44  ;;  %v1260_v60 = vsel %vm1222_vm1, %v3878_v33, 0.0  ;;  %v979_v31 = vadd.f32 %v4883_v39, %v4882_v46  ;;  %v4885_v52 = vld [vmem:[#allocation33_spill] sm:$0xff]  ;;  %v4886_v44 = vld [vmem:[#allocation92_spill] sm:$0xff] }
  0xba   : > { %v1047_v15 = vmul.f32 %v4884_v6, %v4862_v41  ;;  %v1077_v11 = vadd.f32 %v1045_v21, %v977_v37  ;;  %v1259_v62 = vadd.f32 %v1258_v20, %v1257_v9  ;;  %v1145_v19 = vmul.f32 %v3581_v14, %v2155_v38  ;;  %v2128_v21 = vld [vmem:[%s2363_s8 + $0x1a1] sm:$0xff] }
  0xbb   : > { %v1175_v53 = vadd.f32 %v1143_v58, %v1075_v34  ;;  %v3910_v45 = vadd.f32 %v3673_v16, %v1173_v23  ;;  %v1262_v59 = vsel %vm1222_vm1, %v3888_v47, 0.0  ;;  %v980_v49 = vadd.f32 %v3660_v4, %v4885_v52  ;;  %v4887_v23 = vld [vmem:[#allocation7_spill] sm:$0xff]  ;;  %v2159_v46 = vld [vmem:[%s2363_s8 + $0x19a] sm:$0xff] }
  0xbc   : > { %v1048_v29 = vmul.f32 %v4886_v44, %v4862_v41  ;;  %v1078_v32 = vadd.f32 %v1046_v22, %v978_v3  ;;  %v1261_v37 = vadd.f32 %v1260_v60, %v1259_v62  ;;  %v1146_v13 = vmul.f32 %v3581_v14, %v2156_v1  ;;  %v4888_v3 = vld [vmem:[#allocation16_spill] sm:$0xff] }
  0xbd   : > { %v1176_v63 = vadd.f32 %v1144_v48, %v1076_v55  ;;  %v3921_v34 = vadd.f32 %v3673_v16, %v1174_v30  ;;  %v1264_v58 = vsel %vm1222_vm1, %v3898_v24, 0.0  ;;  %v981_v20 = vadd.f32 %v3663_v57, %v4887_v23  ;;  %v4889_v48 = vld [vmem:[#allocation10_spill] sm:$0xff] }
  0xbe   : > { %v1049_v4 = vmul.f32 %v2127_v27, %v4862_v41  ;;  %v1079_v43 = vadd.f32 %v1047_v15, %v979_v31  ;;  %v1263_v35 = vadd.f32 %v1262_v59, %v1261_v37  ;;  %v1147_v22 = vmul.f32 %v3581_v14, %v4888_v3  ;;  %v4890_v31 = vld [vmem:[#allocation17_spill] sm:$0xff]  ;;  %v2160_v27 = vld [vmem:[%s2363_s8 + $0x1a2] sm:$0xff] }
  0xbf   : > { %v1177_v38 = vadd.f32 %v1145_v19, %v1077_v11  ;;  %v3931_v55 = vadd.f32 %v3673_v16, %v1175_v53  ;;  %v1266_v9 = vsel %vm1222_vm1, %v3910_v45, 0.0  ;;  %v982_v30 = vadd.f32 %v3666_v8, %v4889_v48 }
  0xc0   : > { %v1050_v57 = vmul.f32 %v2128_v21, %v4862_v41  ;;  %v1080_v60 = vadd.f32 %v1048_v29, %v980_v49  ;;  %v1265_v39 = vadd.f32 %v1264_v58, %v1263_v35  ;;  %v1148_v6 = vmul.f32 %v3581_v14, %v4890_v31 }
  0xc1   : > { %v1178_v15 = vadd.f32 %v1146_v13, %v1078_v32  ;;  %v3942_v11 = vadd.f32 %v3673_v16, %v1176_v63  ;;  %v1268_v1 = vsel %vm1222_vm1, %v3921_v34, 0.0  ;;  %v1081_v62 = vadd.f32 %v1049_v4, %v981_v20 }
  0xc2   : > { %v1267_v19 = vadd.f32 %v1266_v9, %v1265_v39  ;;  %v1149_v8 = vmul.f32 %v3581_v14, %v2159_v46  ;;  %v1179_v53 = vadd.f32 %v1147_v22, %v1079_v43  ;;  %v3949_v41 = vadd.f32 %v3673_v16, %v1177_v38 }
  0xc3   : > { %v1270_v59 = vsel %vm1222_vm1, %v3931_v55, 0.0  ;;  %v1082_v52 = vadd.f32 %v1050_v57, %v982_v30  ;;  %v1150_v44 = vmul.f32 %v3581_v14, %v2160_v27  ;;  %v1180_v29 = vadd.f32 %v1148_v6, %v1080_v60 }
  0xc4   : > { %v1269_v49 = vadd.f32 %v1268_v1, %v1267_v19  ;;  %v3955_v32 = vadd.f32 %v3673_v16, %v1178_v15  ;;  %v1272_v37 = vsel %vm1222_vm1, %v3942_v11, 0.0  ;;  %v1181_v13 = vadd.f32 %v1149_v8, %v1081_v62 }
  0xc5   : > { %v3960_v63 = vadd.f32 %v3673_v16, %v1179_v53  ;;  %v1274_v58 = vsel %vm1222_vm1, %v3949_v41, 0.0  ;;  %v1182_v20 = vadd.f32 %v1150_v44, %v1082_v52  ;;  %v3965_v4 = vadd.f32 %v3673_v16, %v1180_v29 }
  0xc6   : > { %v1271_v21 = vadd.f32 %v1270_v59, %v1269_v49  ;;  %v1276_v14 = vsel %vm1222_vm1, %v3955_v32, 0.0  ;;  %v3970_v35 = vadd.f32 %v3673_v16, %v1181_v13 }
  0xc7   : > { %v1278_v3 = vsel %vm1222_vm1, %v3960_v63, 0.0  ;;  %v3975_v38 = vadd.f32 %v3673_v16, %v1182_v20  ;;  %v1280_v9 = vsel %vm1222_vm1, %v3965_v4, 0.0 }
  0xc8   : > { %v1273_v23 = vadd.f32 %v1272_v37, %v1271_v21  ;;  %v1282_v30 = vsel %vm1222_vm1, %v3970_v35, 0.0 }
  0xc9   : > { %v1284_v60 = vsel %vm1222_vm1, %v3975_v38, 0.0 }
  0xca   : > { %v1275_v43 = vadd.f32 %v1274_v58, %v1273_v23 }
  0xcc   : > { %v1277_v22 = vadd.f32 %v1276_v14, %v1275_v43 }
  0xce   : > { %v1279_v48 = vadd.f32 %v1278_v3, %v1277_v22 }
  0xd0   : > { %v1281_v57 = vadd.f32 %v1280_v9, %v1279_v48 }
  0xd2   : > { %v1283_v46 = vadd.f32 %v1282_v30, %v1281_v57 }
  0xd4   : > { %v1285_v39 = vadd.f32 %v1284_v60, %v1283_v46 }
  0xd6   : > { %v1286_v31 = vrot.slane %v1285_v39, 4 }
  0xd8   : > { %v1287_v6 = vadd.f32 %v1286_v31, %v1285_v39 }
  0xda   : > { %v1288_v15 = vrot.slane %v1287_v6, 2 }
  0xdc   : > { %v1289_v1 = vadd.f32 %v1288_v15, %v1287_v6 }
  0xde   : > { %v1290_v62 = vrot.slane %v1289_v1, 1 }
  0xe0   : > { %v1291_v16 = vadd.f32 %v1290_v62, %v1289_v1 }
  0xe2   : > { %v3983_v27 = vmul.f32 0.00390625, %v1291_v16 }
  0xe4   : > { %v3987_v19 = vsub.f32 %v3686_v18, %v3983_v27  ;;  %v3991_v8 = vsub.f32 %v3689_v12, %v3983_v27  ;;  %v3995_v53 = vsub.f32 %v3692_v56, %v3983_v27  ;;  %v3999_v59 = vsub.f32 %v3703_v25, %v3983_v27 }
  0xe5   : > { %v4003_v52 = vsub.f32 %v3709_v40, %v3983_v27  ;;  %v4013_v56 = vsub.f32 %v3724_v42, %v3983_v27  ;;  %v4019_v40 = vsub.f32 %v3735_v36, %v3983_v27  ;;  %v4028_v42 = vsub.f32 %v3746_v50, %v3983_v27 }
  0xe6   : > { %v1326_v18 = vmul.f32 %v3987_v19, %v3987_v19  ;;  %v1327_v49 = vmul.f32 %v3991_v8, %v3991_v8  ;;  %v1328_v12 = vmul.f32 %v3995_v53, %v3995_v53  ;;  %v1329_v25 = vmul.f32 %v3999_v59, %v3999_v59 }
  0xe7   : > { %v1330_v44 = vmul.f32 %v4003_v52, %v4003_v52  ;;  %v1331_v58 = vmul.f32 %v4013_v56, %v4013_v56  ;;  %v4035_v20 = vsub.f32 %v3757_v7, %v3983_v27  ;;  %v1332_v14 = vmul.f32 %v4019_v40, %v4019_v40 }
  0xe8   : > { %v1358_v29 = vsel %vm1222_vm1, %v1326_v18, 0.0  ;;  %v1359_v37 = vsel %vm1222_vm1, %v1327_v49, 0.0  ;;  %v1361_v21 = vsel %vm1222_vm1, %v1328_v12, 0.0  ;;  %v1363_v36 = vsel %vm1222_vm1, %v1329_v25, 0.0 }
  0xe9   : > { %v1360_v13 = vadd.f32 %v1359_v37, %v1358_v29  ;;  %v1365_v43 = vsel %vm1222_vm1, %v1330_v44, 0.0  ;;  %v4042_v50 = vsub.f32 %v3768_v5, %v3983_v27  ;;  %v1333_v22 = vmul.f32 %v4028_v42, %v4028_v42 }
  0xea   : > { %v1367_v9 = vsel %vm1222_vm1, %v1331_v58, 0.0  ;;  %v4049_v7 = vsub.f32 %v3779_v51, %v3983_v27  ;;  %v1334_v30 = vmul.f32 %v4035_v20, %v4035_v20  ;;  %v1369_v57 = vsel %vm1222_vm1, %v1332_v14, 0.0 }
  0xeb   : > { %v1362_v23 = vadd.f32 %v1361_v21, %v1360_v13  ;;  %v4056_v5 = vsub.f32 %v3790_v28, %v3983_v27  ;;  %v1335_v46 = vmul.f32 %v4042_v50, %v4042_v50  ;;  %v1371_v39 = vsel %vm1222_vm1, %v1333_v22, 0.0 }
  0xec   : > { %v4063_v51 = vsub.f32 %v3801_v54, %v3983_v27  ;;  %v1336_v6 = vmul.f32 %v4049_v7, %v4049_v7  ;;  %v1373_v15 = vsel %vm1222_vm1, %v1334_v30, 0.0  ;;  %v4070_v28 = vsub.f32 %v3812_v61, %v3983_v27 }
  0xed   : > { %v1364_v3 = vadd.f32 %v1363_v36, %v1362_v23  ;;  %v1337_v62 = vmul.f32 %v4056_v5, %v4056_v5  ;;  %v1375_v16 = vsel %vm1222_vm1, %v1335_v46, 0.0  ;;  %v4077_v54 = vsub.f32 %v3823_v2, %v3983_v27 }
  0xee   : > { %v1338_v49 = vmul.f32 %v4063_v51, %v4063_v51  ;;  %v1377_v12 = vsel %vm1222_vm1, %v1336_v6, 0.0  ;;  %v4084_v61 = vsub.f32 %v3834_v17, %v3983_v27  ;;  %v1339_v44 = vmul.f32 %v4070_v28, %v4070_v28 }
  0xef   : > { %v1366_v48 = vadd.f32 %v1365_v43, %v1364_v3  ;;  %v1379_v29 = vsel %vm1222_vm1, %v1337_v62, 0.0  ;;  %v4091_v2 = vsub.f32 %v3845_v10, %v3983_v27  ;;  %v1340_v21 = vmul.f32 %v4077_v54, %v4077_v54 }
  0xf0   : > { %v1381_v13 = vsel %vm1222_vm1, %v1338_v49, 0.0  ;;  %v4098_v17 = vsub.f32 %v3856_v26, %v3983_v27  ;;  %v1341_v36 = vmul.f32 %v4084_v61, %v4084_v61  ;;  %v1383_v23 = vsel %vm1222_vm1, %v1339_v44, 0.0 }
  0xf1   : > { %v1368_v60 = vadd.f32 %v1367_v9, %v1366_v48  ;;  %v4105_v10 = vsub.f32 %v3867_v0, %v3983_v27  ;;  %v1342_v43 = vmul.f32 %v4091_v2, %v4091_v2  ;;  %v1385_v3 = vsel %vm1222_vm1, %v1340_v21, 0.0 }
  0xf2   : > { %v4112_v26 = vsub.f32 %v3878_v33, %v3983_v27  ;;  %v1343_v9 = vmul.f32 %v4098_v17, %v4098_v17  ;;  %v1387_v48 = vsel %vm1222_vm1, %v1341_v36, 0.0  ;;  %v4119_v0 = vsub.f32 %v3888_v47, %v3983_v27 }
  0xf3   : > { %v1370_v31 = vadd.f32 %v1369_v57, %v1368_v60  ;;  %v1344_v57 = vmul.f32 %v4105_v10, %v4105_v10  ;;  %v1389_v60 = vsel %vm1222_vm1, %v1342_v43, 0.0  ;;  %v4126_v33 = vsub.f32 %v3898_v24, %v3983_v27 }
  0xf4   : > { %v4133_v47 = vsub.f32 %v3910_v45, %v3983_v27  ;;  %v4140_v24 = vsub.f32 %v3921_v34, %v3983_v27  ;;  %v4147_v45 = vsub.f32 %v3931_v55, %v3983_v27  ;;  %v4154_v34 = vsub.f32 %v3942_v11, %v3983_v27 }
  0xf5   : > { %v1372_v1 = vadd.f32 %v1371_v39, %v1370_v31  ;;  %v1345_v39 = vmul.f32 %v4112_v26, %v4112_v26  ;;  %v1391_v31 = vsel %vm1222_vm1, %v1343_v9, 0.0  ;;  %v4161_v55 = vsub.f32 %v3949_v41, %v3983_v27 }
  0xf6   : > { %v4168_v11 = vsub.f32 %v3955_v32, %v3983_v27  ;;  %v4175_v41 = vsub.f32 %v3960_v63, %v3983_v27  ;;  %v4182_v32 = vsub.f32 %v3965_v4, %v3983_v27  ;;  %v4189_v63 = vsub.f32 %v3970_v35, %v3983_v27 }
  0xf7   : > { %v1374_v18 = vadd.f32 %v1373_v15, %v1372_v1  ;;  %v1346_v15 = vmul.f32 %v4119_v0, %v4119_v0  ;;  %v1393_v1 = vsel %vm1222_vm1, %v1344_v57, 0.0  ;;  %v4196_v4 = vsub.f32 %v3975_v38, %v3983_v27 }
  0xf8   : > { %v1356_v35 = vmul.f32 %v4189_v63, %v4189_v63 }
  0xf9   : > { %v1376_v25 = vadd.f32 %v1375_v16, %v1374_v18  ;;  %v1347_v16 = vmul.f32 %v4126_v33, %v4126_v33  ;;  %v1395_v18 = vsel %vm1222_vm1, %v1345_v39, 0.0 }
  0xfa   : > { %v1417_v38 = vsel %vm1222_vm1, %v1356_v35, 0.0 }
  0xfb   : > { %v1378_v37 = vadd.f32 %v1377_v12, %v1376_v25  ;;  %v1348_v12 = vmul.f32 %v4133_v47, %v4133_v47  ;;  %v1397_v25 = vsel %vm1222_vm1, %v1346_v15, 0.0 }
  0xfd   : > { %v1380_v58 = vadd.f32 %v1379_v29, %v1378_v37  ;;  %v1349_v29 = vmul.f32 %v4140_v24, %v4140_v24  ;;  %v1399_v37 = vsel %vm1222_vm1, %v1347_v16, 0.0  ;;  %v1357_v16 = vmul.f32 %v4196_v4, %v4196_v4 }
  0xff   : > { %v1382_v14 = vadd.f32 %v1381_v13, %v1380_v58  ;;  %v1350_v13 = vmul.f32 %v4147_v45, %v4147_v45  ;;  %v1401_v58 = vsel %vm1222_vm1, %v1348_v12, 0.0  ;;  %v1419_v12 = vsel %vm1222_vm1, %v1357_v16, 0.0 }
 0x101   : > { %v1384_v22 = vadd.f32 %v1383_v23, %v1382_v14  ;;  %v1351_v23 = vmul.f32 %v4154_v34, %v4154_v34  ;;  %v1403_v14 = vsel %vm1222_vm1, %v1349_v29, 0.0 }
 0x103   : > { %v1386_v30 = vadd.f32 %v1385_v3, %v1384_v22  ;;  %v1352_v3 = vmul.f32 %v4161_v55, %v4161_v55  ;;  %v1405_v22 = vsel %vm1222_vm1, %v1350_v13, 0.0 }
 0x105   : > { %v1388_v46 = vadd.f32 %v1387_v48, %v1386_v30  ;;  %v1353_v48 = vmul.f32 %v4168_v11, %v4168_v11  ;;  %v1407_v30 = vsel %vm1222_vm1, %v1351_v23, 0.0 }
 0x107   : > { %v1390_v6 = vadd.f32 %v1389_v60, %v1388_v46  ;;  %v1354_v60 = vmul.f32 %v4175_v41, %v4175_v41  ;;  %v1409_v46 = vsel %vm1222_vm1, %v1352_v3, 0.0  ;;  %v4214_v3 = vld [vmem:[%s4494_s3] ss:$0 sm:$0xff] }
 0x109   : > { %v1392_v62 = vadd.f32 %v1391_v31, %v1390_v6  ;;  %v1355_v31 = vmul.f32 %v4182_v32, %v4182_v32  ;;  %v1411_v6 = vsel %vm1222_vm1, %v1353_v48, 0.0 }
 0x10b   : > { %v1394_v49 = vadd.f32 %v1393_v1, %v1392_v62  ;;  %v1413_v1 = vsel %vm1222_vm1, %v1354_v60, 0.0 }
 0x10d   : > { %v1396_v44 = vadd.f32 %v1395_v18, %v1394_v49  ;;  %v1415_v18 = vsel %vm1222_vm1, %v1355_v31, 0.0 }
 0x10f   : > { %v1398_v21 = vadd.f32 %v1397_v25, %v1396_v44 }
 0x111   : > { %v1400_v36 = vadd.f32 %v1399_v37, %v1398_v21 }
 0x113   : > { %v1402_v43 = vadd.f32 %v1401_v58, %v1400_v36 }
 0x115   : > { %v1404_v9 = vadd.f32 %v1403_v14, %v1402_v43 }
 0x117   : > { %v1406_v57 = vadd.f32 %v1405_v22, %v1404_v9 }
 0x119   : > { %v1408_v39 = vadd.f32 %v1407_v30, %v1406_v57  ;;  %v4227_v57 = vld [vmem:[%s4495_s4] ss:$0 sm:$0xff] }
 0x11b   : > { %v1410_v15 = vadd.f32 %v1409_v46, %v1408_v39 }
 0x11d   : > { %v1412_v62 = vadd.f32 %v1411_v6, %v1410_v15 }
 0x11f   : > { %v1414_v49 = vadd.f32 %v1413_v1, %v1412_v62 }
 0x121   : > { %v1416_v27 = vadd.f32 %v1415_v18, %v1414_v49 }
 0x123   : > { %v1418_v25 = vadd.f32 %v1417_v38, %v1416_v27 }
 0x125   : > { %v1420_v44 = vadd.f32 %v1419_v12, %v1418_v25 }
 0x127   : > { %v1421_v29 = vrot.slane %v1420_v44, 4 }
 0x129   : > { %v1422_v37 = vadd.f32 %v1421_v29, %v1420_v44 }
 0x12b   : > { %v1423_v21 = vrot.slane %v1422_v37, 2 }
 0x12d   : > { %v1424_v13 = vadd.f32 %v1423_v21, %v1422_v37 }
 0x12f   : > { %v1425_v58 = vrot.slane %v1424_v13, 1 }
 0x131   : > { %v1426_v36 = vadd.f32 %v1425_v58, %v1424_v13 }
 0x133   : > { %v1427_v23 = vmul.f32 0.00390625, %v1426_v36 }
 0x135   : > { %v1428_v14 = vadd.f32 1e-05, %v1427_v23 }
 0x137   : > { %2296 = vrsqrt.f32 %v1428_v14 }
 0x144   : > { %v4209_v43 = vpop.eup %2296 }
 0x145   : > { %v1430_v22 = vmul.f32 %v4209_v43, %v3987_v19  ;;  %v1446_v9 = vmul.f32 %v4209_v43, %v4091_v2  ;;  %v1431_v48 = vmul.f32 %v4209_v43, %v3991_v8  ;;  %v1447_v30 = vmul.f32 %v4209_v43, %v4098_v17 }
 0x146   : > { %v1432_v60 = vmul.f32 %v4209_v43, %v3995_v53  ;;  %v1448_v19 = vmul.f32 %v4209_v43, %v4105_v10  ;;  %v1433_v2 = vmul.f32 %v4209_v43, %v3999_v59  ;;  %v1449_v8 = vmul.f32 %v4209_v43, %v4112_v26 }
 0x147   : > { %v1469_v46 = vmul.f32 %v4214_v3, %v1430_v22  ;;  %v1485_v17 = vmul.f32 %v4214_v3, %v1446_v9  ;;  %v1470_v39 = vmul.f32 %v4214_v3, %v1431_v48  ;;  %v1486_v31 = vmul.f32 %v4214_v3, %v1447_v30 }
 0x148   : > { %v1471_v6 = vmul.f32 %v4214_v3, %v1432_v60  ;;  %v1487_v53 = vmul.f32 %v4214_v3, %v1448_v19  ;;  %v1472_v10 = vmul.f32 %v4214_v3, %v1433_v2  ;;  %v1488_v15 = vmul.f32 %v4214_v3, %v1449_v8 }
 0x149   : > { %v1508_v59 = vadd.f32 %v4227_v57, %v1469_v46  ;;  %v1524_v26 = vadd.f32 %v4227_v57, %v1485_v17  ;;  %v1509_v35 = vadd.f32 %v4227_v57, %v1470_v39  ;;  %v1525_v1 = vadd.f32 %v4227_v57, %v1486_v31 }
 0x14a   : > { %v1510_v62 = vadd.f32 %v4227_v57, %v1471_v6  ;;  %v1526_v16 = vadd.f32 %v4227_v57, %v1487_v53  ;;  %v1511_v18 = vadd.f32 %v4227_v57, %v1472_v10  ;;  %v1527_v49 = vadd.f32 %v4227_v57, %v1488_v15 }
 0x14b   : > { %2237 = vmatprep.mubr.msk.f32.mxu0 %vm1222_vm1, %v1508_v59  ;;  %2261 = vmatprep.mubr.msk.f32.mxu1 %vm1222_vm1, %v1524_v26  ;;  %v1434_v38 = vmul.f32 %v4209_v43, %v4003_v52  ;;  %v1450_v27 = vmul.f32 %v4209_v43, %v4119_v0  ;;  %v1435_v12 = vmul.f32 %v4209_v43, %v4013_v56 }
 0x14c   : > { %2238 = vmatmul.mubr.msk.f32.vlgmr.msra.gmra.mxu0 %vm1222_vm1, %v1509_v35  ;;  %2262 = vmatmul.mubr.msk.f32.vlgmr.msra.gmra.mxu1 %vm1222_vm1, %v1525_v1  ;;  %v1451_v25 = vmul.f32 %v4209_v43, %v4126_v33  ;;  %v1436_v44 = vmul.f32 %v4209_v43, %v4019_v40  ;;  %v1452_v29 = vmul.f32 %v4209_v43, %v4133_v47 }
 0x14d   : > { %2240 = vmatprep.mubr.msk.f32.mxu0 %vm1222_vm1, %v1510_v62  ;;  %2264 = vmatprep.mubr.msk.f32.mxu1 %vm1222_vm1, %v1526_v16  ;;  %v1473_v52 = vmul.f32 %v4214_v3, %v1434_v38  ;;  %v1489_v56 = vmul.f32 %v4214_v3, %v1450_v27  ;;  %v1474_v0 = vmul.f32 %v4214_v3, %v1435_v12 }
 0x14e   : > { %v1490_v37 = vmul.f32 %v4214_v3, %v1451_v25  ;;  %v1475_v33 = vmul.f32 %v4214_v3, %v1436_v44  ;;  %v1491_v21 = vmul.f32 %v4214_v3, %v1452_v29  ;;  %v1437_v40 = vmul.f32 %v4209_v43, %v4028_v42 }
 0x14f   : > { %v1512_v47 = vadd.f32 %v4227_v57, %v1473_v52  ;;  %v1528_v13 = vadd.f32 %v4227_v57, %v1489_v56  ;;  %v1513_v58 = vadd.f32 %v4227_v57, %v1474_v0  ;;  %v1453_v36 = vmul.f32 %v4209_v43, %v4140_v24 }
 0x150   : > { %2241 = vmatmul.mubr.msk.f32.gmra.mxu0 %vm1222_vm1, %v1511_v18  ;;  %2265 = vmatmul.mubr.msk.f32.gmra.mxu1 %vm1222_vm1, %v1527_v49  ;;  %v1529_v23 = vadd.f32 %v4227_v57, %v1490_v37  ;;  %v1514_v14 = vadd.f32 %v4227_v57, %v1475_v33  ;;  %v1530_v22 = vadd.f32 %v4227_v57, %v1491_v21 }
 0x151   : > { %2243 = vmatprep.mubr.msk.f32.mxu0 %vm1222_vm1, %v1512_v47  ;;  %2267 = vmatprep.mubr.msk.f32.mxu1 %vm1222_vm1, %v1528_v13  ;;  %v1476_v42 = vmul.f32 %v4214_v3, %v1437_v40  ;;  %v1492_v9 = vmul.f32 %v4214_v3, %v1453_v36  ;;  %v1438_v24 = vmul.f32 %v4209_v43, %v4035_v20 }
 0x152   : > { %v1454_v48 = vmul.f32 %v4209_v43, %v4147_v45  ;;  %v1439_v30 = vmul.f32 %v4209_v43, %v4042_v50  ;;  %v1455_v60 = vmul.f32 %v4209_v43, %v4154_v34  ;;  %v1440_v19 = vmul.f32 %v4209_v43, %v4049_v7 }
 0x153   : > { %v1515_v2 = vadd.f32 %v4227_v57, %v1476_v42  ;;  %v1531_v8 = vadd.f32 %v4227_v57, %v1492_v9  ;;  %v1477_v46 = vmul.f32 %v4214_v3, %v1438_v24  ;;  %v1456_v20 = vmul.f32 %v4209_v43, %v4161_v55 }
 0x154   : > { %2244 = vmatmul.mubr.msk.f32.gmra.mxu0 %vm1222_vm1, %v1513_v58  ;;  %2268 = vmatmul.mubr.msk.f32.gmra.mxu1 %vm1222_vm1, %v1529_v23  ;;  %v1493_v50 = vmul.f32 %v4214_v3, %v1454_v48  ;;  %v1478_v45 = vmul.f32 %v4214_v3, %v1439_v30  ;;  %v1494_v34 = vmul.f32 %v4214_v3, %v1455_v60 }
 0x155   : > { %2246 = vmatprep.mubr.msk.f32.mxu0 %vm1222_vm1, %v1514_v14  ;;  %2270 = vmatprep.mubr.msk.f32.mxu1 %vm1222_vm1, %v1530_v22  ;;  %v1516_v7 = vadd.f32 %v4227_v57, %v1477_v46  ;;  %v1479_v17 = vmul.f32 %v4214_v3, %v1440_v19  ;;  %v1495_v55 = vmul.f32 %v4214_v3, %v1456_v20 }
 0x156   : > { %v1532_v39 = vadd.f32 %v4227_v57, %v1493_v50  ;;  %v1517_v31 = vadd.f32 %v4227_v57, %v1478_v45  ;;  %v1533_v6 = vadd.f32 %v4227_v57, %v1494_v34  ;;  %v1441_v53 = vmul.f32 %v4209_v43, %v4056_v5 }
 0x157   : > { %v1518_v10 = vadd.f32 %v4227_v57, %v1479_v17  ;;  %v1534_v15 = vadd.f32 %v4227_v57, %v1495_v55  ;;  %v1457_v59 = vmul.f32 %v4209_v43, %v4168_v11  ;;  %v1442_v26 = vmul.f32 %v4209_v43, %v4063_v51 }
 0x158   : > { %2247 = vmatmul.mubr.msk.f32.gmra.mxu0 %vm1222_vm1, %v1515_v2  ;;  %2271 = vmatmul.mubr.msk.f32.gmra.mxu1 %vm1222_vm1, %v1531_v8  ;;  %v1480_v35 = vmul.f32 %v4214_v3, %v1441_v53  ;;  %v1458_v1 = vmul.f32 %v4209_v43, %v4175_v41  ;;  %v1443_v5 = vmul.f32 %v4209_v43, %v4070_v28 }
 0x159   : > { %2249 = vmatprep.mubr.msk.f32.mxu0 %vm1222_vm1, %v1516_v7  ;;  %2273 = vmatprep.mubr.msk.f32.mxu1 %vm1222_vm1, %v1532_v39  ;;  %v1496_v11 = vmul.f32 %v4214_v3, %v1457_v59  ;;  %v1481_v51 = vmul.f32 %v4214_v3, %v1442_v26  ;;  %v1459_v62 = vmul.f32 %v4209_v43, %v4182_v32 }
 0x15a   : > { %v1497_v16 = vmul.f32 %v4214_v3, %v1458_v1  ;;  %v1444_v18 = vmul.f32 %v4209_v43, %v4077_v54  ;;  %v1519_v41 = vadd.f32 %v4227_v57, %v1480_v35  ;;  %v1482_v49 = vmul.f32 %v4214_v3, %v1443_v5 }
 0x15b   : > { %v1535_v28 = vadd.f32 %v4227_v57, %v1496_v11  ;;  %v1460_v38 = vmul.f32 %v4209_v43, %v4189_v63  ;;  %v1520_v32 = vadd.f32 %v4227_v57, %v1481_v51  ;;  %v1498_v12 = vmul.f32 %v4214_v3, %v1459_v62 }
 0x15c   : > { %2250 = vmatmul.mubr.msk.f32.gmra.mxu0 %vm1222_vm1, %v1517_v31  ;;  %2274 = vmatmul.mubr.msk.f32.gmra.mxu1 %vm1222_vm1, %v1533_v6  ;;  %v1536_v27 = vadd.f32 %v4227_v57, %v1497_v16  ;;  %v1483_v54 = vmul.f32 %v4214_v3, %v1444_v18  ;;  %v1445_v63 = vmul.f32 %v4209_v43, %v4084_v61 }
 0x15d   : > { %2252 = vmatprep.mubr.msk.f32.mxu0 %vm1222_vm1, %v1518_v10  ;;  %2276 = vmatprep.mubr.msk.f32.mxu1 %vm1222_vm1, %v1534_v15  ;;  %v1499_v25 = vmul.f32 %v4214_v3, %v1460_v38  ;;  %v1461_v44 = vmul.f32 %v4209_v43, %v4196_v4  ;;  %v1521_v29 = vadd.f32 %v4227_v57, %v1482_v49 }
 0x15e   : > { %v1537_v52 = vadd.f32 %v4227_v57, %v1498_v12  ;;  %v1484_v56 = vmul.f32 %v4214_v3, %v1445_v63  ;;  %v1522_v61 = vadd.f32 %v4227_v57, %v1483_v54 }
 0x15f   : > { %v1500_v0 = vmul.f32 %v4214_v3, %v1461_v44  ;;  %v1538_v4 = vadd.f32 %v4227_v57, %v1499_v25  ;;  %v4385_v3 = vld [vmem:[%s4497_s6] ss:$0 sm:$0xff] }
 0x160   : > { %2253 = vmatmul.mubr.msk.f32.gmra.mxu0 %vm1222_vm1, %v1519_v41  ;;  %2277 = vmatmul.mubr.msk.f32.gmra.mxu1 %vm1222_vm1, %v1535_v28  ;;  %v1523_v43 = vadd.f32 %v4227_v57, %v1484_v56 }
 0x161   : > { %2255 = vmatprep.mubr.msk.f32.mxu0 %vm1222_vm1, %v1520_v32  ;;  %2279 = vmatprep.mubr.msk.f32.mxu1 %vm1222_vm1, %v1536_v27  ;;  %v1539_v37 = vadd.f32 %v4227_v57, %v1500_v0 }
 0x164   : > { %2256 = vmatmul.mubr.msk.f32.gmra.mxu0 %vm1222_vm1, %v1521_v29  ;;  %2280 = vmatmul.mubr.msk.f32.gmra.mxu1 %vm1222_vm1, %v1537_v52 }
 0x165   : > { %2258 = vmatprep.mubr.msk.f32.mxu0 %vm1222_vm1, %v1522_v61  ;;  %2282 = vmatprep.mubr.msk.f32.mxu1 %vm1222_vm1, %v1538_v4 }
 0x168   : > { %2259 = vmatmul.mubr.msk.f32.gmra.mxu0 %vm1222_vm1, %v1523_v43  ;;  %2283 = vmatmul.mubr.msk.f32.gmra.mxu1 %vm1222_vm1, %v1539_v37 }
 0x20c   : > { %v2239_v57 = vpop.f32.mrf.mxu0  ;;  %v2263_v33 = vpop.f32.mrf.mxu1 }
 0x20d   : > { %v1720_v21 = vadd.f32 %v2239_v57, %v4385_v3  ;;  %v1800_v40 = vadd.f32 %v2263_v33, %v4385_v3 }
 0x20e   : > { %v1714_v47 = vpop.f32.mrf.mxu0  ;;  %v1794_v13 = vpop.f32.mrf.mxu1 }
 0x20f   : > { %1875 = vst.msk [vmem:[%s4390_s26 + $0x8] sm:$0xff] %vm1873_vm2, %v1720_v21  ;;  %1891 = vst.msk [vmem:[%s4390_s26 + $0x88] sm:$0xff] %vm1873_vm2, %v1800_v40  ;;  %v1715_v58 = vadd.f32 %v4385_v3, %v1714_v47  ;;  %v1795_v36 = vadd.f32 %v4385_v3, %v1794_v13 }
 0x210   : > { %v2242_v23 = vpop.f32.mrf.mxu0  ;;  %v2266_v14 = vpop.f32.mrf.mxu1 }
 0x211   : > { %1874 = vst.msk [vmem:[%s4390_s26] sm:$0xff] %vm1873_vm2, %v1715_v58  ;;  %1890 = vst.msk [vmem:[%s4390_s26 + $0x80] sm:$0xff] %vm1873_vm2, %v1795_v36  ;;  %v1730_v22 = vadd.f32 %v2242_v23, %v4385_v3  ;;  %v1810_v42 = vadd.f32 %v2266_v14, %v4385_v3 }
 0x212   : > { %v1724_v9 = vpop.f32.mrf.mxu0  ;;  %v1804_v24 = vpop.f32.mrf.mxu1 }
 0x213   : > { %1877 = vst.msk [vmem:[%s4390_s26 + $0x18] sm:$0xff] %vm1873_vm2, %v1730_v22  ;;  %1893 = vst.msk [vmem:[%s4390_s26 + $0x98] sm:$0xff] %vm1873_vm2, %v1810_v42  ;;  %v1725_v48 = vadd.f32 %v4385_v3, %v1724_v9  ;;  %v1805_v30 = vadd.f32 %v4385_v3, %v1804_v24 }
 0x214   : > { %v2245_v60 = vpop.f32.mrf.mxu0  ;;  %v2269_v19 = vpop.f32.mrf.mxu1 }
 0x215   : > { %1876 = vst.msk [vmem:[%s4390_s26 + $0x10] sm:$0xff] %vm1873_vm2, %v1725_v48  ;;  %1892 = vst.msk [vmem:[%s4390_s26 + $0x90] sm:$0xff] %vm1873_vm2, %v1805_v30  ;;  %v1740_v2 = vadd.f32 %v2245_v60, %v4385_v3  ;;  %v1820_v8 = vadd.f32 %v2269_v19, %v4385_v3 }
 0x216   : > { %v1734_v46 = vpop.f32.mrf.mxu0  ;;  %v1814_v20 = vpop.f32.mrf.mxu1 }
 0x217   : > { %1879 = vst.msk [vmem:[%s4390_s26 + $0x28] sm:$0xff] %vm1873_vm2, %v1740_v2  ;;  %1895 = vst.msk [vmem:[%s4390_s26 + $0xa8] sm:$0xff] %vm1873_vm2, %v1820_v8  ;;  %v1735_v50 = vadd.f32 %v4385_v3, %v1734_v46  ;;  %v1815_v45 = vadd.f32 %v4385_v3, %v1814_v20 }
 0x218   : > { %v2248_v34 = vpop.f32.mrf.mxu0  ;;  %v2272_v7 = vpop.f32.mrf.mxu1 }
 0x219   : > { %1878 = vst.msk [vmem:[%s4390_s26 + $0x20] sm:$0xff] %vm1873_vm2, %v1735_v50  ;;  %1894 = vst.msk [vmem:[%s4390_s26 + $0xa0] sm:$0xff] %vm1873_vm2, %v1815_v45  ;;  %v1750_v17 = vadd.f32 %v2248_v34, %v4385_v3  ;;  %v1830_v55 = vadd.f32 %v2272_v7, %v4385_v3 }
 0x21a   : > { %v1744_v39 = vpop.f32.mrf.mxu0  ;;  %v1824_v31 = vpop.f32.mrf.mxu1 }
 0x21b   : > { %1881 = vst.msk [vmem:[%s4390_s26 + $0x38] sm:$0xff] %vm1873_vm2, %v1750_v17  ;;  %1897 = vst.msk [vmem:[%s4390_s26 + $0xb8] sm:$0xff] %vm1873_vm2, %v1830_v55  ;;  %v1745_v6 = vadd.f32 %v4385_v3, %v1744_v39  ;;  %v1825_v53 = vadd.f32 %v4385_v3, %v1824_v31 }
 0x21c   : > { %v2251_v10 = vpop.f32.mrf.mxu0  ;;  %v2275_v15 = vpop.f32.mrf.mxu1 }
 0x21d   : > { %1880 = vst.msk [vmem:[%s4390_s26 + $0x30] sm:$0xff] %vm1873_vm2, %v1745_v6  ;;  %1896 = vst.msk [vmem:[%s4390_s26 + $0xb0] sm:$0xff] %vm1873_vm2, %v1825_v53  ;;  %v1760_v59 = vadd.f32 %v2251_v10, %v4385_v3  ;;  %v1840_v26 = vadd.f32 %v2275_v15, %v4385_v3 }
 0x21e   : > { %v1754_v35 = vpop.f32.mrf.mxu0  ;;  %v1834_v1 = vpop.f32.mrf.mxu1 }
 0x21f   : > { %1883 = vst.msk [vmem:[%s4390_s26 + $0x48] sm:$0xff] %vm1873_vm2, %v1760_v59  ;;  %1899 = vst.msk [vmem:[%s4390_s26 + $0xc8] sm:$0xff] %vm1873_vm2, %v1840_v26  ;;  %v1755_v5 = vadd.f32 %v4385_v3, %v1754_v35  ;;  %v1835_v11 = vadd.f32 %v4385_v3, %v1834_v1 }
 0x220   : > { %v2254_v51 = vpop.f32.mrf.mxu0  ;;  %v2278_v62 = vpop.f32.mrf.mxu1 }
 0x221   : > { %1882 = vst.msk [vmem:[%s4390_s26 + $0x40] sm:$0xff] %vm1873_vm2, %v1755_v5  ;;  %1898 = vst.msk [vmem:[%s4390_s26 + $0xc0] sm:$0xff] %vm1873_vm2, %v1835_v11  ;;  %v1770_v16 = vadd.f32 %v2254_v51, %v4385_v3  ;;  %v1850_v18 = vadd.f32 %v2278_v62, %v4385_v3 }
 0x222   : > { %v1764_v41 = vpop.f32.mrf.mxu0  ;;  %v1844_v28 = vpop.f32.mrf.mxu1 }
 0x223   : > { %1885 = vst.msk [vmem:[%s4390_s26 + $0x58] sm:$0xff] %vm1873_vm2, %v1770_v16  ;;  %1901 = vst.msk [vmem:[%s4390_s26 + $0xd8] sm:$0xff] %vm1873_vm2, %v1850_v18  ;;  %v1765_v49 = vadd.f32 %v4385_v3, %v1764_v41  ;;  %v1845_v38 = vadd.f32 %v4385_v3, %v1844_v28 }
 0x224   : > { %v2257_v32 = vpop.f32.mrf.mxu0  ;;  %v2281_v27 = vpop.f32.mrf.mxu1 }
 0x225   : > { %1884 = vst.msk [vmem:[%s4390_s26 + $0x50] sm:$0xff] %vm1873_vm2, %v1765_v49  ;;  %1900 = vst.msk [vmem:[%s4390_s26 + $0xd0] sm:$0xff] %vm1873_vm2, %v1845_v38  ;;  %v1780_v12 = vadd.f32 %v2257_v32, %v4385_v3  ;;  %v1860_v54 = vadd.f32 %v2281_v27, %v4385_v3 }
 0x226   : > { %v1774_v25 = vpop.f32.mrf.mxu0  ;;  %v1854_v63 = vpop.f32.mrf.mxu1 }
 0x227   : > { %1887 = vst.msk [vmem:[%s4390_s26 + $0x68] sm:$0xff] %vm1873_vm2, %v1780_v12  ;;  %1903 = vst.msk [vmem:[%s4390_s26 + $0xe8] sm:$0xff] %vm1873_vm2, %v1860_v54  ;;  %v1775_v44 = vadd.f32 %v4385_v3, %v1774_v25  ;;  %v1855_v29 = vadd.f32 %v4385_v3, %v1854_v63 }
 0x228   : > { %v2260_v52 = vpop.f32.mrf.mxu0  ;;  %v2284_v56 = vpop.f32.mrf.mxu1 }
 0x229   : > { %1886 = vst.msk [vmem:[%s4390_s26 + $0x60] sm:$0xff] %vm1873_vm2, %v1775_v44  ;;  %1902 = vst.msk [vmem:[%s4390_s26 + $0xe0] sm:$0xff] %vm1873_vm2, %v1855_v29  ;;  %v1790_v0 = vadd.f32 %v2260_v52, %v4385_v3  ;;  %v1870_v61 = vadd.f32 %v2284_v56, %v4385_v3 }
 0x22a   : > { %v1784_v4 = vpop.f32.mrf.mxu0  ;;  %v1864_v43 = vpop.f32.mrf.mxu1 }
 0x22b   : > { %1889 = vst.msk [vmem:[%s4390_s26 + $0x78] sm:$0xff] %vm1873_vm2, %v1790_v0  ;;  %1905 = vst.msk [vmem:[%s4390_s26 + $0xf8] sm:$0xff] %vm1873_vm2, %v1870_v61  ;;  %v1785_v37 = vadd.f32 %v4385_v3, %v1784_v4  ;;  %v1865_v57 = vadd.f32 %v4385_v3, %v1864_v43 }
 0x22d   : > { %1888 = vst.msk [vmem:[%s4390_s26 + $0x70] sm:$0xff] %vm1873_vm2, %v1785_v37  ;;  %1904 = vst.msk [vmem:[%s4390_s26 + $0xf0] sm:$0xff] %vm1873_vm2, %v1865_v57 }
 0x22e PF: > { %s17_s24 = sadd.s32 1, %s2304_s24  }
 0x22f   : > { %p14_p4 = scmp.ge.s32.totalorder %s17_s24, 4  }
 0x231   :  { %16 = sbr.rel (!%p14_p4) target bundleno = 1 (0x1), region = 80 }

</bundles_post_ra>
